<compile_context>
chip_gen: v5e
topology: v5e:2x2
jax: 0.10.0
libtpu: 0.0.40
codegen_flags: <defaults>
</compile_context>

<pallas_src>
import functools

import jax
import jax.numpy as jnp
from jax.experimental import pallas as pl
from jax.experimental.pallas import tpu as pltpu


# ----------------------------- static geometry ------------------------------
# 28x28 input is implied by Linear(400, ...): conv1 pad=2 -> 32x32, conv -> 28x28,
# pool -> 14x14x6; conv2 -> 10x10x16, pool -> 5x5x16 = 400.
K = 5
H_IN = 28
HP1, WP1 = 32, 32            # padded conv1 input height / width
HO1, WO1, HPOOL1 = 28, 28, 14
PITCH1 = HP1 // 2            # 16 rows per image after conv1 (14 valid + 2 junk)
C1 = 6
HP2, WP2 = 14, 14
HO2, WO2, HPOOL2, WPOOL2 = 10, 10, 5, 5
PITCH2 = PITCH1 // 2         # 8 rows per image in the pooled conv2 scratch (5 valid + 3 junk)
C2 = 16


# -------------------- shared conv + bias + ReLU + 2x2 pool ------------------

def _conv_pool_block(x_ref, t_ref, b_row, sel_e, sel_o, *, nb, pitch_in):
    """Conv(+bias, ReLU) + 2x2 max-pool on a block of `nb` images.

    x_ref : (nb*pitch_in, Wp*Cin) f32 ref; rows of image b live at [b*pitch_in, ...).
    t_ref : (K, Wp*Cin, Wo*Cout) bf16 block-Toeplitz conv weights.
    b_row : (1, Wo*Cout) f32 bias pre-tiled over w.
    sel_e/sel_o : (Wo*Cout, Wpool*Cout) bf16 0/1 even/odd column selectors.

    Returns (nb*pitch_in//2 - 2, Wpool*Cout) f32; row b*(pitch_in//2)+i holds pooled
    output row i of image b (rows with i >= Hpool are junk and never consumed).
    """
    s = nb * (pitch_in // 2) - 2          # trailing 2 rows are junk of the last image
    y_e = None
    y_o = None
    for kh in range(K):
        t_kh = t_ref[kh]                                           # (Wp*Cin, Wo*Cout) bf16
        a_e = x_ref[pl.ds(kh, s, 2), :].astype(jnp.bfloat16)       # conv rows 2i   (strided load)
        a_o = x_ref[pl.ds(kh + 1, s, 2), :].astype(jnp.bfloat16)   # conv rows 2i+1
        d_e = jnp.dot(a_e, t_kh, preferred_element_type=jnp.float32)
        d_o = jnp.dot(a_o, t_kh, preferred_element_type=jnp.float32)
        y_e = d_e if y_e is None else y_e + d_e
        y_o = d_o if y_o is None else y_o + d_o
    # H-pool (VPU max) then bias + ReLU (monotone, so order is equivalent to torch's).
    m = jnp.maximum(jnp.maximum(y_e, y_o) + b_row, 0.0)            # (s, Wo*Cout) f32
    m16 = m.astype(jnp.bfloat16)
    # W-pool: pick columns 2j / 2j+1 with exact 0/1 bf16 selection matmuls, VPU max.
    p_e = jnp.dot(m16, sel_e, preferred_element_type=jnp.float32)
    p_o = jnp.dot(m16, sel_o, preferred_element_type=jnp.float32)
    return jnp.maximum(p_e, p_o)                                   # (s, Wpool*Cout) f32


# ------------------------------- conv1 kernel -------------------------------

def _conv1_kernel(x_ref, t_ref, b_ref, se_ref, so_ref, o_ref, *, nb):
    pooled = _conv_pool_block(x_ref, t_ref, b_ref[...], se_ref[...], so_ref[...],
                              nb=nb, pitch_in=HP1)
    s = pooled.shape[0]
    o_ref[pl.ds(0, s), :] = pooled
    # zero the last 2 (junk) rows of the block so the whole output is initialized
    o_ref[pl.ds(s, 2), :] = jnp.zeros((2, o_ref.shape[-1]), o_ref.dtype)


def conv1_pool(x2d, t1, b1_row, sel_e, sel_o, *, batch, nb):
    wp_cin = x2d.shape[-1]
    n_pool = sel_e.shape[-1]                     # 14*6 = 84
    kernel = functools.partial(_conv1_kernel, nb=nb)
    return pl.pallas_call(
        kernel,
        out_shape=jax.ShapeDtypeStruct((batch * PITCH1, n_pool), jnp.float32),
        grid=(batch // nb,),
        in_specs=[
            pl.BlockSpec((nb * HP1, wp_cin), lambda i: (i, 0)),
            pl.BlockSpec(t1.shape, lambda i: (0, 0, 0)),       # VMEM-resident weights
            pl.BlockSpec(b1_row.shape, lambda i: (0, 0)),
            pl.BlockSpec(sel_e.shape, lambda i: (0, 0)),
            pl.BlockSpec(sel_o.shape, lambda i: (0, 0)),
        ],
        out_specs=pl.BlockSpec((nb * PITCH1, n_pool), lambda i: (i, 0)),
        compiler_params=pltpu.CompilerParams(dimension_semantics=("parallel",)),
    )(x2d, t1, b1_row, sel_e, sel_o)


# --------------------- conv2 + pool + fused 3x Linear head ------------------

def _conv2_fc_kernel(x_ref, t_ref, b_ref, se_ref, so_ref,
                     w1_ref, fb1_ref, w2_ref, fb2_ref, w3_ref, fb3_ref,
                     o_ref, pool_scr, *, nb):
    pooled = _conv_pool_block(x_ref, t_ref, b_ref[...], se_ref[...], so_ref[...],
                              nb=nb, pitch_in=PITCH1)             # (nb*8 - 2, 80) f32
    s = pooled.shape[0]
    pool_scr[pl.ds(0, s), :] = pooled                             # rows b*8 + h, h<5 valid

    # fc1: contract the (h, w*16+c) layout directly with a per-h weight slice,
    # pulling the 5 valid rows per image with sublane-strided (stride=8) reads.
    acc = None
    for h in range(HPOOL2):
        p_h = pool_scr[pl.ds(h, nb, PITCH2), :].astype(jnp.bfloat16)   # (nb, 80)
        d = jnp.dot(p_h, w1_ref[h], preferred_element_type=jnp.float32)
        acc = d if acc is None else acc + d
    h1 = acc + fb1_ref[...]                                        # (nb, 120)
    h2 = jnp.dot(h1.astype(jnp.bfloat16), w2_ref[...],
                 preferred_element_type=jnp.float32) + fb2_ref[...]
    out = jnp.dot(h2.astype(jnp.bfloat16), w3_ref[...],
                  preferred_element_type=jnp.float32) + fb3_ref[...]
    o_ref[...] = out.astype(o_ref.dtype)


def conv2_pool_fc(act2d, t2, b2_row, sel_e, sel_o, w1, fb1, w2, fb2, w3, fb3, *, batch, nb):
    n_in_lanes = act2d.shape[-1]                 # 14*6 = 84
    n_pool = sel_e.shape[-1]                     # 5*16 = 80
    n_class = w3.shape[-1]
    kernel = functools.partial(_conv2_fc_kernel, nb=nb)
    return pl.pallas_call(
        kernel,
        out_shape=jax.ShapeDtypeStruct((batch, n_class), jnp.float32),
        grid=(batch // nb,),
        in_specs=[
            pl.BlockSpec((nb * PITCH1, n_in_lanes), lambda i: (i, 0)),
            pl.BlockSpec(t2.shape, lambda i: (0, 0, 0)),
            pl.BlockSpec(b2_row.shape, lambda i: (0, 0)),
            pl.BlockSpec(sel_e.shape, lambda i: (0, 0)),
            pl.BlockSpec(sel_o.shape, lambda i: (0, 0)),
            pl.BlockSpec(w1.shape, lambda i: (0, 0, 0)),
            pl.BlockSpec(fb1.shape, lambda i: (0, 0)),
            pl.BlockSpec(w2.shape, lambda i: (0, 0)),
            pl.BlockSpec(fb2.shape, lambda i: (0, 0)),
            pl.BlockSpec(w3.shape, lambda i: (0, 0)),
            pl.BlockSpec(fb3.shape, lambda i: (0, 0)),
        ],
        out_specs=pl.BlockSpec((nb, n_class), lambda i: (i, 0)),
        scratch_shapes=[pltpu.VMEM((nb * PITCH2, n_pool), jnp.float32)],
        compiler_params=pltpu.CompilerParams(dimension_semantics=("parallel",)),
    )(act2d, t2, b2_row, sel_e, sel_o, w1, fb1, w2, fb2, w3, fb3)


# ------------------------------ params / glue -------------------------------

def init_params(key, in_dim, n_class):
    ks = jax.random.split(key, 10)
    s = 0.05
    return {
        "conv1_w": s * jax.random.normal(ks[0], (C1, in_dim, K, K), jnp.float32),
        "conv1_b": s * jax.random.normal(ks[1], (C1,), jnp.float32),
        "conv2_w": s * jax.random.normal(ks[2], (C2, C1, K, K), jnp.float32),
        "conv2_b": s * jax.random.normal(ks[3], (C2,), jnp.float32),
        "fc1_w":   s * jax.random.normal(ks[4], (120, 400), jnp.float32),
        "fc1_b":   s * jax.random.normal(ks[5], (120,), jnp.float32),
        "fc2_w":   s * jax.random.normal(ks[6], (84, 120), jnp.float32),
        "fc2_b":   s * jax.random.normal(ks[7], (84,), jnp.float32),
        "fc3_w":   s * jax.random.normal(ks[8], (n_class, 84), jnp.float32),
        "fc3_b":   s * jax.random.normal(ks[9], (n_class,), jnp.float32),
    }


def _toeplitz(w_oihw, wp, wo):
    """OIHW conv weight -> (K, Wp*Cin, Wo*Cout) bf16 block-Toeplitz (lane = w*C + c)."""
    cout, cin, k, _ = w_oihw.shape
    diff = jnp.arange(wp)[:, None] - jnp.arange(wo)[None, :]       # (wp, wo) = w_in - w_out
    valid = (diff >= 0) & (diff < k)
    kw = jnp.clip(diff, 0, k - 1)
    wt = jnp.transpose(w_oihw, (2, 3, 1, 0))                       # (kh, kw, cin, cout)
    g = wt[:, kw, :, :]                                            # (kh, wp, wo, cin, cout)
    g = jnp.where(valid[None, :, :, None, None], g, 0.0)
    t = jnp.transpose(g, (0, 1, 3, 2, 4)).reshape(k, wp * cin, wo * cout)
    return t.astype(jnp.bfloat16)


def _wpool_selectors(wo, cout):
    """0/1 bf16 selectors picking columns 2j (even) / 2j+1 (odd) of the w*C+c lanes."""
    wpool = wo // 2
    r = jnp.arange(wo * cout)
    c = jnp.arange(wpool * cout)
    same_c = (r % cout)[:, None] == (c % cout)[None, :]
    even = ((r // cout)[:, None] == 2 * (c // cout)[None, :]) & same_c
    odd = ((r // cout)[:, None] == 2 * (c // cout)[None, :] + 1) & same_c
    return even.astype(jnp.bfloat16), odd.astype(jnp.bfloat16)


def prepare_params(p):
    """One-time (outside the jitted forward) re-layout into kernel-ready tensors."""
    se1, so1 = _wpool_selectors(WO1, C1)
    se2, so2 = _wpool_selectors(WO2, C2)
    # PyTorch flatten of (16,5,5) is c*25 + h*5 + w; kernel layout is row h, lane w*16+c.
    fc1 = jnp.transpose(p["fc1_w"].reshape(120, C2, HPOOL2, WPOOL2),
                        (2, 3, 1, 0)).reshape(HPOOL2, WPOOL2 * C2, 120)
    return {
        "t1": _toeplitz(p["conv1_w"], WP1, WO1),                       # (5, 32*Cin, 168)
        "c1_b": jnp.tile(p["conv1_b"], WO1).reshape(1, -1).astype(jnp.float32),
        "se1": se1, "so1": so1,
        "t2": _toeplitz(p["conv2_w"], WP2, WO2),                       # (5, 84, 160)
        "c2_b": jnp.tile(p["conv2_b"], WO2).reshape(1, -1).astype(jnp.float32),
        "se2": se2, "so2": so2,
        "fc1_w": fc1.astype(jnp.bfloat16),                             # (5, 80, 120)
        "fc1_b": p["fc1_b"].reshape(1, -1).astype(jnp.float32),
        "fc2_w": p["fc2_w"].T.astype(jnp.bfloat16),
        "fc2_b": p["fc2_b"].reshape(1, -1).astype(jnp.float32),
        "fc3_w": p["fc3_w"].T.astype(jnp.bfloat16),
        "fc3_b": p["fc3_b"].reshape(1, -1).astype(jnp.float32),
    }


def _largest_divisor_leq(n, cap):
    cap = max(1, min(n, cap))
    for d in range(cap, 0, -1):
        if n % d == 0:
            return d
    return 1


def _pick_nb_conv1(batch):
    # keep >= 2 grid steps when possible (v7x has 2 TensorCores); cap block at 8 images
    cap = 8 if batch >= 16 else max(1, batch // 2)
    return _largest_divisor_leq(batch, cap)


def _pick_nb_conv2(batch):
    # fused-FC output block rows must be a multiple of 8 or the full batch
    return 8 if batch % 8 == 0 else batch


def cnn_forward(kp, x_nchw):
    b, cin = x_nchw.shape[0], x_nchw.shape[1]
    # NCHW -> NHWC, pad=2, then flatten to the 2-D (B*32, 32*Cin) row-major slab layout.
    x = jnp.transpose(x_nchw, (0, 2, 3, 1)).astype(jnp.float32)
    x = jnp.pad(x, ((0, 0), (2, 2), (2, 2), (0, 0)))
    x2d = x.reshape(b * HP1, WP1 * cin)
    h = conv1_pool(x2d, kp["t1"], kp["c1_b"], kp["se1"], kp["so1"],
                   batch=b, nb=_pick_nb_conv1(b))                     # (B*16, 84) f32
    return conv2_pool_fc(h, kp["t2"], kp["c2_b"], kp["se2"], kp["so2"],
                         kp["fc1_w"], kp["fc1_b"], kp["fc2_w"], kp["fc2_b"],
                         kp["fc3_w"], kp["fc3_b"],
                         batch=b, nb=_pick_nb_conv2(b))               # (B, n_class)


def reference_forward(params, x_nchw):
    # pure-JAX f32 reference mirroring the PyTorch module
    y = jax.lax.conv_general_dilated(x_nchw, params["conv1_w"], (1, 1),
                                     ((2, 2), (2, 2)),
                                     dimension_numbers=("NCHW", "OIHW", "NCHW"))
    y = jax.nn.relu(y + params["conv1_b"][None, :, None, None])
    y = jax.lax.reduce_window(y, -jnp.inf, jax.lax.max, (1, 1, 2, 2), (1, 1, 2, 2), "VALID")
    y = jax.lax.conv_general_dilated(y, params["conv2_w"], (1, 1),
                                     ((0, 0), (0, 0)),
                                     dimension_numbers=("NCHW", "OIHW", "NCHW"))
    y = jax.nn.relu(y + params["conv2_b"][None, :, None, None])
    y = jax.lax.reduce_window(y, -jnp.inf, jax.lax.max, (1, 1, 2, 2), (1, 1, 2, 2), "VALID")
    flat = y.reshape(y.shape[0], -1)
    h = flat @ params["fc1_w"].T + params["fc1_b"]
    h = h @ params["fc2_w"].T + params["fc2_b"]
    return h @ params["fc3_w"].T + params["fc3_b"]


if __name__ == "__main__":
    key = jax.random.PRNGKey(0)
    kparam, kx = jax.random.split(key)
    B, in_dim, n_class = 2, 1, 10            # 28x28 input is implied by Linear(400, ...)
    params = init_params(kparam, in_dim, n_class)
    x = jax.random.normal(kx, (B, in_dim, 28, 28), jnp.float32)

    kernel_params = prepare_params(params)   # one-time weight re-layout (outside jit)
    fwd = jax.jit(cnn_forward)
    out = jax.block_until_ready(fwd(kernel_params, x))
    assert out.shape == (B, n_class), out.shape

    ref = jax.block_until_ready(reference_forward(params, x))
    assert jnp.allclose(out, ref, atol=3e-2, rtol=3e-2), float(jnp.max(jnp.abs(out - ref)))

    print("KERNEL_OK")
</pallas_src>

<mosaic_0001>
module attributes {stable_mosaic.version = 11 : i64} {
  func.func @_conv1_kernel(%arg0: i32, %arg1: memref<32x32xf32, #tpu.memory_space<vmem>>, %arg2: memref<5x32x168xbf16, #tpu.memory_space<vmem>>, %arg3: memref<1x168xf32, #tpu.memory_space<vmem>>, %arg4: memref<168x84xbf16, #tpu.memory_space<vmem>>, %arg5: memref<168x84xbf16, #tpu.memory_space<vmem>>, %arg6: memref<16x84xf32, #tpu.memory_space<vmem>>) attributes {dimension_semantics = [#tpu.dimension_semantics<parallel>], iteration_bounds = array<i64: 2>, scalar_prefetch = 0 : i64, scratch_operands = 0 : i64, tpu.core_type = #tpu.core_type<tc>, window_params = [{transform_indices = @transform_0, window_bounds = array<i64: 32, 32>}, {pipeline_mode = #tpu.pipeline_mode<synchronous>, transform_indices = @transform_1, window_bounds = array<i64: 5, 32, 168>}, {pipeline_mode = #tpu.pipeline_mode<synchronous>, transform_indices = @transform_2, window_bounds = array<i64: 1, 168>}, {pipeline_mode = #tpu.pipeline_mode<synchronous>, transform_indices = @transform_3, window_bounds = array<i64: 168, 84>}, {pipeline_mode = #tpu.pipeline_mode<synchronous>, transform_indices = @transform_4, window_bounds = array<i64: 168, 84>}, {transform_indices = @transform_5, window_bounds = array<i64: 16, 84>}]} {
    %c0 = arith.constant 0 : index
    %c0_0 = arith.constant 0 : index
    %0 = vector.load %arg3[%c0, %c0_0] : memref<1x168xf32, #tpu.memory_space<vmem>>, vector<1x168xf32>
    %c0_1 = arith.constant 0 : index
    %c0_2 = arith.constant 0 : index
    %1 = vector.load %arg4[%c0_1, %c0_2] : memref<168x84xbf16, #tpu.memory_space<vmem>>, vector<168x84xbf16>
    %c0_3 = arith.constant 0 : index
    %c0_4 = arith.constant 0 : index
    %2 = vector.load %arg5[%c0_3, %c0_4] : memref<168x84xbf16, #tpu.memory_space<vmem>>, vector<168x84xbf16>
    %c0_5 = arith.constant 0 : index
    %c0_6 = arith.constant 0 : index
    %c0_7 = arith.constant 0 : index
    %3 = vector.load %arg2[%c0_5, %c0_6, %c0_7] : memref<5x32x168xbf16, #tpu.memory_space<vmem>>, vector<1x32x168xbf16>
    %4 = vector.shape_cast %3 : vector<1x32x168xbf16> to vector<32x168xbf16>
    %c0_8 = arith.constant 0 : index
    %c0_9 = arith.constant 0 : index
    %5 = tpu.strided_load %arg1[%c0_8, %c0_9] {strides = array<i32: 2, 1>} : memref<32x32xf32, #tpu.memory_space<vmem>>, vector<14x32xf32>
    %6 = arith.truncf %5 : vector<14x32xf32> to vector<14x32xbf16>
    %c1 = arith.constant 1 : index
    %c0_10 = arith.constant 0 : index
    %7 = tpu.strided_load %arg1[%c1, %c0_10] {strides = array<i32: 2, 1>} : memref<32x32xf32, #tpu.memory_space<vmem>>, vector<14x32xf32>
    %8 = arith.truncf %7 : vector<14x32xf32> to vector<14x32xbf16>
    %cst = arith.constant dense<0.000000e+00> : vector<14x168xf32>
    %9 = tpu.matmul %6, %4, %cst {dimension_numbers = #tpu.dot_dimension_numbers<[1], [0], [0], [1], [0, 0, 1, 1], [], []>} : vector<14x32xbf16>, vector<32x168xbf16>, vector<14x168xf32> -> vector<14x168xf32>
    %cst_11 = arith.constant dense<0.000000e+00> : vector<14x168xf32>
    %10 = tpu.matmul %8, %4, %cst_11 {dimension_numbers = #tpu.dot_dimension_numbers<[1], [0], [0], [1], [0, 0, 1, 1], [], []>} : vector<14x32xbf16>, vector<32x168xbf16>, vector<14x168xf32> -> vector<14x168xf32>
    %c1_12 = arith.constant 1 : index
    %c0_13 = arith.constant 0 : index
    %c0_14 = arith.constant 0 : index
    %11 = vector.load %arg2[%c1_12, %c0_13, %c0_14] : memref<5x32x168xbf16, #tpu.memory_space<vmem>>, vector<1x32x168xbf16>
    %12 = vector.shape_cast %11 : vector<1x32x168xbf16> to vector<32x168xbf16>
    %c1_15 = arith.constant 1 : index
    %c0_16 = arith.constant 0 : index
    %13 = tpu.strided_load %arg1[%c1_15, %c0_16] {strides = array<i32: 2, 1>} : memref<32x32xf32, #tpu.memory_space<vmem>>, vector<14x32xf32>
    %14 = arith.truncf %13 : vector<14x32xf32> to vector<14x32xbf16>
    %c2 = arith.constant 2 : index
    %c0_17 = arith.constant 0 : index
    %15 = tpu.strided_load %arg1[%c2, %c0_17] {strides = array<i32: 2, 1>} : memref<32x32xf32, #tpu.memory_space<vmem>>, vector<14x32xf32>
    %16 = arith.truncf %15 : vector<14x32xf32> to vector<14x32xbf16>
    %cst_18 = arith.constant dense<0.000000e+00> : vector<14x168xf32>
    %17 = tpu.matmul %14, %12, %cst_18 {dimension_numbers = #tpu.dot_dimension_numbers<[1], [0], [0], [1], [0, 0, 1, 1], [], []>} : vector<14x32xbf16>, vector<32x168xbf16>, vector<14x168xf32> -> vector<14x168xf32>
    %cst_19 = arith.constant dense<0.000000e+00> : vector<14x168xf32>
    %18 = tpu.matmul %16, %12, %cst_19 {dimension_numbers = #tpu.dot_dimension_numbers<[1], [0], [0], [1], [0, 0, 1, 1], [], []>} : vector<14x32xbf16>, vector<32x168xbf16>, vector<14x168xf32> -> vector<14x168xf32>
    %19 = arith.addf %9, %17 : vector<14x168xf32>
    %20 = arith.addf %10, %18 : vector<14x168xf32>
    %c2_20 = arith.constant 2 : index
    %c0_21 = arith.constant 0 : index
    %c0_22 = arith.constant 0 : index
    %21 = vector.load %arg2[%c2_20, %c0_21, %c0_22] : memref<5x32x168xbf16, #tpu.memory_space<vmem>>, vector<1x32x168xbf16>
    %22 = vector.shape_cast %21 : vector<1x32x168xbf16> to vector<32x168xbf16>
    %c2_23 = arith.constant 2 : index
    %c0_24 = arith.constant 0 : index
    %23 = tpu.strided_load %arg1[%c2_23, %c0_24] {strides = array<i32: 2, 1>} : memref<32x32xf32, #tpu.memory_space<vmem>>, vector<14x32xf32>
    %24 = arith.truncf %23 : vector<14x32xf32> to vector<14x32xbf16>
    %c3 = arith.constant 3 : index
    %c0_25 = arith.constant 0 : index
    %25 = tpu.strided_load %arg1[%c3, %c0_25] {strides = array<i32: 2, 1>} : memref<32x32xf32, #tpu.memory_space<vmem>>, vector<14x32xf32>
    %26 = arith.truncf %25 : vector<14x32xf32> to vector<14x32xbf16>
    %cst_26 = arith.constant dense<0.000000e+00> : vector<14x168xf32>
    %27 = tpu.matmul %24, %22, %cst_26 {dimension_numbers = #tpu.dot_dimension_numbers<[1], [0], [0], [1], [0, 0, 1, 1], [], []>} : vector<14x32xbf16>, vector<32x168xbf16>, vector<14x168xf32> -> vector<14x168xf32>
    %cst_27 = arith.constant dense<0.000000e+00> : vector<14x168xf32>
    %28 = tpu.matmul %26, %22, %cst_27 {dimension_numbers = #tpu.dot_dimension_numbers<[1], [0], [0], [1], [0, 0, 1, 1], [], []>} : vector<14x32xbf16>, vector<32x168xbf16>, vector<14x168xf32> -> vector<14x168xf32>
    %29 = arith.addf %19, %27 : vector<14x168xf32>
    %30 = arith.addf %20, %28 : vector<14x168xf32>
    %c3_28 = arith.constant 3 : index
    %c0_29 = arith.constant 0 : index
    %c0_30 = arith.constant 0 : index
    %31 = vector.load %arg2[%c3_28, %c0_29, %c0_30] : memref<5x32x168xbf16, #tpu.memory_space<vmem>>, vector<1x32x168xbf16>
    %32 = vector.shape_cast %31 : vector<1x32x168xbf16> to vector<32x168xbf16>
    %c3_31 = arith.constant 3 : index
    %c0_32 = arith.constant 0 : index
    %33 = tpu.strided_load %arg1[%c3_31, %c0_32] {strides = array<i32: 2, 1>} : memref<32x32xf32, #tpu.memory_space<vmem>>, vector<14x32xf32>
    %34 = arith.truncf %33 : vector<14x32xf32> to vector<14x32xbf16>
    %c4 = arith.constant 4 : index
    %c0_33 = arith.constant 0 : index
    %35 = tpu.strided_load %arg1[%c4, %c0_33] {strides = array<i32: 2, 1>} : memref<32x32xf32, #tpu.memory_space<vmem>>, vector<14x32xf32>
    %36 = arith.truncf %35 : vector<14x32xf32> to vector<14x32xbf16>
    %cst_34 = arith.constant dense<0.000000e+00> : vector<14x168xf32>
    %37 = tpu.matmul %34, %32, %cst_34 {dimension_numbers = #tpu.dot_dimension_numbers<[1], [0], [0], [1], [0, 0, 1, 1], [], []>} : vector<14x32xbf16>, vector<32x168xbf16>, vector<14x168xf32> -> vector<14x168xf32>
    %cst_35 = arith.constant dense<0.000000e+00> : vector<14x168xf32>
    %38 = tpu.matmul %36, %32, %cst_35 {dimension_numbers = #tpu.dot_dimension_numbers<[1], [0], [0], [1], [0, 0, 1, 1], [], []>} : vector<14x32xbf16>, vector<32x168xbf16>, vector<14x168xf32> -> vector<14x168xf32>
    %39 = arith.addf %29, %37 : vector<14x168xf32>
    %40 = arith.addf %30, %38 : vector<14x168xf32>
    %c4_36 = arith.constant 4 : index
    %c0_37 = arith.constant 0 : index
    %c0_38 = arith.constant 0 : index
    %41 = vector.load %arg2[%c4_36, %c0_37, %c0_38] : memref<5x32x168xbf16, #tpu.memory_space<vmem>>, vector<1x32x168xbf16>
    %42 = vector.shape_cast %41 : vector<1x32x168xbf16> to vector<32x168xbf16>
    %c4_39 = arith.constant 4 : index
    %c0_40 = arith.constant 0 : index
    %43 = tpu.strided_load %arg1[%c4_39, %c0_40] {strides = array<i32: 2, 1>} : memref<32x32xf32, #tpu.memory_space<vmem>>, vector<14x32xf32>
    %44 = arith.truncf %43 : vector<14x32xf32> to vector<14x32xbf16>
    %c5 = arith.constant 5 : index
    %c0_41 = arith.constant 0 : index
    %45 = tpu.strided_load %arg1[%c5, %c0_41] {strides = array<i32: 2, 1>} : memref<32x32xf32, #tpu.memory_space<vmem>>, vector<14x32xf32>
    %46 = arith.truncf %45 : vector<14x32xf32> to vector<14x32xbf16>
    %cst_42 = arith.constant dense<0.000000e+00> : vector<14x168xf32>
    %47 = tpu.matmul %44, %42, %cst_42 {dimension_numbers = #tpu.dot_dimension_numbers<[1], [0], [0], [1], [0, 0, 1, 1], [], []>} : vector<14x32xbf16>, vector<32x168xbf16>, vector<14x168xf32> -> vector<14x168xf32>
    %cst_43 = arith.constant dense<0.000000e+00> : vector<14x168xf32>
    %48 = tpu.matmul %46, %42, %cst_43 {dimension_numbers = #tpu.dot_dimension_numbers<[1], [0], [0], [1], [0, 0, 1, 1], [], []>} : vector<14x32xbf16>, vector<32x168xbf16>, vector<14x168xf32> -> vector<14x168xf32>
    %49 = arith.addf %39, %47 : vector<14x168xf32>
    %50 = arith.addf %40, %48 : vector<14x168xf32>
    %51 = arith.maximumf %49, %50 : vector<14x168xf32>
    %52 = vector.broadcast %0 : vector<1x168xf32> to vector<14x168xf32>
    %53 = arith.addf %51, %52 : vector<14x168xf32>
    %cst_44 = arith.constant 0.000000e+00 : f32
    %54 = vector.broadcast %cst_44 : f32 to vector<14x168xf32>
    %55 = arith.maximumf %53, %54 : vector<14x168xf32>
    %56 = arith.truncf %55 : vector<14x168xf32> to vector<14x168xbf16>
    %cst_45 = arith.constant dense<0.000000e+00> : vector<14x84xf32>
    %57 = tpu.matmul %56, %1, %cst_45 {dimension_numbers = #tpu.dot_dimension_numbers<[1], [0], [0], [1], [0, 0, 1, 1], [], []>} : vector<14x168xbf16>, vector<168x84xbf16>, vector<14x84xf32> -> vector<14x84xf32>
    %cst_46 = arith.constant dense<0.000000e+00> : vector<14x84xf32>
    %58 = tpu.matmul %56, %2, %cst_46 {dimension_numbers = #tpu.dot_dimension_numbers<[1], [0], [0], [1], [0, 0, 1, 1], [], []>} : vector<14x168xbf16>, vector<168x84xbf16>, vector<14x84xf32> -> vector<14x84xf32>
    %59 = arith.maximumf %57, %58 : vector<14x84xf32>
    %c0_47 = arith.constant 0 : index
    %c0_48 = arith.constant 0 : index
    %60 = vector.load %arg6[%c0_47, %c0_48] : memref<16x84xf32, #tpu.memory_space<vmem>>, vector<14x84xf32>
    tpu.vector_store %arg6[%c0_47, %c0_48], %59 {strides = array<i32>} : memref<16x84xf32, #tpu.memory_space<vmem>>, vector<14x84xf32>,
    %cst_49 = arith.constant 0.000000e+00 : f32
    %61 = vector.broadcast %cst_49 : f32 to vector<2x84xf32>
    %c14 = arith.constant 14 : index
    %c0_50 = arith.constant 0 : index
    %62 = vector.load %arg6[%c14, %c0_50] : memref<16x84xf32, #tpu.memory_space<vmem>>, vector<2x84xf32>
    tpu.vector_store %arg6[%c14, %c0_50], %61 {strides = array<i32>} : memref<16x84xf32, #tpu.memory_space<vmem>>, vector<2x84xf32>,
    return
  }
  func.func @transform_0(%arg0: i32) -> (i32, i32) {
    %c0_i32 = arith.constant 0 : i32
    %c0_i32_0 = arith.constant 0 : i32
    return %arg0, %c0_i32 : i32, i32
  }
  func.func @transform_1(%arg0: i32) -> (i32, i32, i32) {
    %c0_i32 = arith.constant 0 : i32
    %c0_i32_0 = arith.constant 0 : i32
    %c0_i32_1 = arith.constant 0 : i32
    %c0_i32_2 = arith.constant 0 : i32
    return %c0_i32, %c0_i32_0, %c0_i32_1 : i32, i32, i32
  }
  func.func @transform_2(%arg0: i32) -> (i32, i32) {
    %c0_i32 = arith.constant 0 : i32
    %c0_i32_0 = arith.constant 0 : i32
    %c0_i32_1 = arith.constant 0 : i32
    return %c0_i32, %c0_i32_0 : i32, i32
  }
  func.func @transform_3(%arg0: i32) -> (i32, i32) {
    %c0_i32 = arith.constant 0 : i32
    %c0_i32_0 = arith.constant 0 : i32
    %c0_i32_1 = arith.constant 0 : i32
    return %c0_i32, %c0_i32_0 : i32, i32
  }
  func.func @transform_4(%arg0: i32) -> (i32, i32) {
    %c0_i32 = arith.constant 0 : i32
    %c0_i32_0 = arith.constant 0 : i32
    %c0_i32_1 = arith.constant 0 : i32
    return %c0_i32, %c0_i32_0 : i32, i32
  }
  func.func @transform_5(%arg0: i32) -> (i32, i32) {
    %c0_i32 = arith.constant 0 : i32
    %c0_i32_0 = arith.constant 0 : i32
    return %arg0, %c0_i32 : i32, i32
  }
}

module attributes {stable_mosaic.version = 11 : i64} {
  func.func @_conv2_fc_kernel(%arg0: i32, %arg1: memref<32x84xf32, #tpu.memory_space<vmem>>, %arg2: memref<5x84x160xbf16, #tpu.memory_space<vmem>>, %arg3: memref<1x160xf32, #tpu.memory_space<vmem>>, %arg4: memref<160x80xbf16, #tpu.memory_space<vmem>>, %arg5: memref<160x80xbf16, #tpu.memory_space<vmem>>, %arg6: memref<5x80x120xbf16, #tpu.memory_space<vmem>>, %arg7: memref<1x120xf32, #tpu.memory_space<vmem>>, %arg8: memref<120x84xbf16, #tpu.memory_space<vmem>>, %arg9: memref<1x84xf32, #tpu.memory_space<vmem>>, %arg10: memref<84x10xbf16, #tpu.memory_space<vmem>>, %arg11: memref<1x10xf32, #tpu.memory_space<vmem>>, %arg12: memref<2x10xf32, #tpu.memory_space<vmem>>, %arg13: memref<16x80xf32, #tpu.memory_space<vmem>>) attributes {dimension_semantics = [#tpu.dimension_semantics<parallel>], iteration_bounds = array<i64: 1>, scalar_prefetch = 0 : i64, scratch_operands = 1 : i64, tpu.core_type = #tpu.core_type<tc>, window_params = [{transform_indices = @transform_0, window_bounds = array<i64: 32, 84>}, {pipeline_mode = #tpu.pipeline_mode<synchronous>, transform_indices = @transform_1, window_bounds = array<i64: 5, 84, 160>}, {pipeline_mode = #tpu.pipeline_mode<synchronous>, transform_indices = @transform_2, window_bounds = array<i64: 1, 160>}, {pipeline_mode = #tpu.pipeline_mode<synchronous>, transform_indices = @transform_3, window_bounds = array<i64: 160, 80>}, {pipeline_mode = #tpu.pipeline_mode<synchronous>, transform_indices = @transform_4, window_bounds = array<i64: 160, 80>}, {pipeline_mode = #tpu.pipeline_mode<synchronous>, transform_indices = @transform_5, window_bounds = array<i64: 5, 80, 120>}, {pipeline_mode = #tpu.pipeline_mode<synchronous>, transform_indices = @transform_6, window_bounds = array<i64: 1, 120>}, {pipeline_mode = #tpu.pipeline_mode<synchronous>, transform_indices = @transform_7, window_bounds = array<i64: 120, 84>}, {pipeline_mode = #tpu.pipeline_mode<synchronous>, transform_indices = @transform_8, window_bounds = array<i64: 1, 84>}, {pipeline_mode = #tpu.pipeline_mode<synchronous>, transform_indices = @transform_9, window_bounds = array<i64: 84, 10>}, {pipeline_mode = #tpu.pipeline_mode<synchronous>, transform_indices = @transform_10, window_bounds = array<i64: 1, 10>}, {transform_indices = @transform_11, window_bounds = array<i64: 2, 10>}]} {
    %c0 = arith.constant 0 : index
    %c0_0 = arith.constant 0 : index
    %0 = vector.load %arg3[%c0, %c0_0] : memref<1x160xf32, #tpu.memory_space<vmem>>, vector<1x160xf32>
    %c0_1 = arith.constant 0 : index
    %c0_2 = arith.constant 0 : index
    %1 = vector.load %arg4[%c0_1, %c0_2] : memref<160x80xbf16, #tpu.memory_space<vmem>>, vector<160x80xbf16>
    %c0_3 = arith.constant 0 : index
    %c0_4 = arith.constant 0 : index
    %2 = vector.load %arg5[%c0_3, %c0_4] : memref<160x80xbf16, #tpu.memory_space<vmem>>, vector<160x80xbf16>
    %c0_5 = arith.constant 0 : index
    %c0_6 = arith.constant 0 : index
    %c0_7 = arith.constant 0 : index
    %3 = vector.load %arg2[%c0_5, %c0_6, %c0_7] : memref<5x84x160xbf16, #tpu.memory_space<vmem>>, vector<1x84x160xbf16>
    %4 = vector.shape_cast %3 : vector<1x84x160xbf16> to vector<84x160xbf16>
    %c0_8 = arith.constant 0 : index
    %c0_9 = arith.constant 0 : index
    %5 = tpu.strided_load %arg1[%c0_8, %c0_9] {strides = array<i32: 2, 1>} : memref<32x84xf32, #tpu.memory_space<vmem>>, vector<14x84xf32>
    %6 = arith.truncf %5 : vector<14x84xf32> to vector<14x84xbf16>
    %c1 = arith.constant 1 : index
    %c0_10 = arith.constant 0 : index
    %7 = tpu.strided_load %arg1[%c1, %c0_10] {strides = array<i32: 2, 1>} : memref<32x84xf32, #tpu.memory_space<vmem>>, vector<14x84xf32>
    %8 = arith.truncf %7 : vector<14x84xf32> to vector<14x84xbf16>
    %cst = arith.constant dense<0.000000e+00> : vector<14x160xf32>
    %9 = tpu.matmul %6, %4, %cst {dimension_numbers = #tpu.dot_dimension_numbers<[1], [0], [0], [1], [0, 0, 1, 1], [], []>} : vector<14x84xbf16>, vector<84x160xbf16>, vector<14x160xf32> -> vector<14x160xf32>
    %cst_11 = arith.constant dense<0.000000e+00> : vector<14x160xf32>
    %10 = tpu.matmul %8, %4, %cst_11 {dimension_numbers = #tpu.dot_dimension_numbers<[1], [0], [0], [1], [0, 0, 1, 1], [], []>} : vector<14x84xbf16>, vector<84x160xbf16>, vector<14x160xf32> -> vector<14x160xf32>
    %c1_12 = arith.constant 1 : index
    %c0_13 = arith.constant 0 : index
    %c0_14 = arith.constant 0 : index
    %11 = vector.load %arg2[%c1_12, %c0_13, %c0_14] : memref<5x84x160xbf16, #tpu.memory_space<vmem>>, vector<1x84x160xbf16>
    %12 = vector.shape_cast %11 : vector<1x84x160xbf16> to vector<84x160xbf16>
    %c1_15 = arith.constant 1 : index
    %c0_16 = arith.constant 0 : index
    %13 = tpu.strided_load %arg1[%c1_15, %c0_16] {strides = array<i32: 2, 1>} : memref<32x84xf32, #tpu.memory_space<vmem>>, vector<14x84xf32>
    %14 = arith.truncf %13 : vector<14x84xf32> to vector<14x84xbf16>
    %c2 = arith.constant 2 : index
    %c0_17 = arith.constant 0 : index
    %15 = tpu.strided_load %arg1[%c2, %c0_17] {strides = array<i32: 2, 1>} : memref<32x84xf32, #tpu.memory_space<vmem>>, vector<14x84xf32>
    %16 = arith.truncf %15 : vector<14x84xf32> to vector<14x84xbf16>
    %cst_18 = arith.constant dense<0.000000e+00> : vector<14x160xf32>
    %17 = tpu.matmul %14, %12, %cst_18 {dimension_numbers = #tpu.dot_dimension_numbers<[1], [0], [0], [1], [0, 0, 1, 1], [], []>} : vector<14x84xbf16>, vector<84x160xbf16>, vector<14x160xf32> -> vector<14x160xf32>
    %cst_19 = arith.constant dense<0.000000e+00> : vector<14x160xf32>
    %18 = tpu.matmul %16, %12, %cst_19 {dimension_numbers = #tpu.dot_dimension_numbers<[1], [0], [0], [1], [0, 0, 1, 1], [], []>} : vector<14x84xbf16>, vector<84x160xbf16>, vector<14x160xf32> -> vector<14x160xf32>
    %19 = arith.addf %9, %17 : vector<14x160xf32>
    %20 = arith.addf %10, %18 : vector<14x160xf32>
    %c2_20 = arith.constant 2 : index
    %c0_21 = arith.constant 0 : index
    %c0_22 = arith.constant 0 : index
    %21 = vector.load %arg2[%c2_20, %c0_21, %c0_22] : memref<5x84x160xbf16, #tpu.memory_space<vmem>>, vector<1x84x160xbf16>
    %22 = vector.shape_cast %21 : vector<1x84x160xbf16> to vector<84x160xbf16>
    %c2_23 = arith.constant 2 : index
    %c0_24 = arith.constant 0 : index
    %23 = tpu.strided_load %arg1[%c2_23, %c0_24] {strides = array<i32: 2, 1>} : memref<32x84xf32, #tpu.memory_space<vmem>>, vector<14x84xf32>
    %24 = arith.truncf %23 : vector<14x84xf32> to vector<14x84xbf16>
    %c3 = arith.constant 3 : index
    %c0_25 = arith.constant 0 : index
    %25 = tpu.strided_load %arg1[%c3, %c0_25] {strides = array<i32: 2, 1>} : memref<32x84xf32, #tpu.memory_space<vmem>>, vector<14x84xf32>
    %26 = arith.truncf %25 : vector<14x84xf32> to vector<14x84xbf16>
    %cst_26 = arith.constant dense<0.000000e+00> : vector<14x160xf32>
    %27 = tpu.matmul %24, %22, %cst_26 {dimension_numbers = #tpu.dot_dimension_numbers<[1], [0], [0], [1], [0, 0, 1, 1], [], []>} : vector<14x84xbf16>, vector<84x160xbf16>, vector<14x160xf32> -> vector<14x160xf32>
    %cst_27 = arith.constant dense<0.000000e+00> : vector<14x160xf32>
    %28 = tpu.matmul %26, %22, %cst_27 {dimension_numbers = #tpu.dot_dimension_numbers<[1], [0], [0], [1], [0, 0, 1, 1], [], []>} : vector<14x84xbf16>, vector<84x160xbf16>, vector<14x160xf32> -> vector<14x160xf32>
    %29 = arith.addf %19, %27 : vector<14x160xf32>
    %30 = arith.addf %20, %28 : vector<14x160xf32>
    %c3_28 = arith.constant 3 : index
    %c0_29 = arith.constant 0 : index
    %c0_30 = arith.constant 0 : index
    %31 = vector.load %arg2[%c3_28, %c0_29, %c0_30] : memref<5x84x160xbf16, #tpu.memory_space<vmem>>, vector<1x84x160xbf16>
    %32 = vector.shape_cast %31 : vector<1x84x160xbf16> to vector<84x160xbf16>
    %c3_31 = arith.constant 3 : index
    %c0_32 = arith.constant 0 : index
    %33 = tpu.strided_load %arg1[%c3_31, %c0_32] {strides = array<i32: 2, 1>} : memref<32x84xf32, #tpu.memory_space<vmem>>, vector<14x84xf32>
    %34 = arith.truncf %33 : vector<14x84xf32> to vector<14x84xbf16>
    %c4 = arith.constant 4 : index
    %c0_33 = arith.constant 0 : index
    %35 = tpu.strided_load %arg1[%c4, %c0_33] {strides = array<i32: 2, 1>} : memref<32x84xf32, #tpu.memory_space<vmem>>, vector<14x84xf32>
    %36 = arith.truncf %35 : vector<14x84xf32> to vector<14x84xbf16>
    %cst_34 = arith.constant dense<0.000000e+00> : vector<14x160xf32>
    %37 = tpu.matmul %34, %32, %cst_34 {dimension_numbers = #tpu.dot_dimension_numbers<[1], [0], [0], [1], [0, 0, 1, 1], [], []>} : vector<14x84xbf16>, vector<84x160xbf16>, vector<14x160xf32> -> vector<14x160xf32>
    %cst_35 = arith.constant dense<0.000000e+00> : vector<14x160xf32>
    %38 = tpu.matmul %36, %32, %cst_35 {dimension_numbers = #tpu.dot_dimension_numbers<[1], [0], [0], [1], [0, 0, 1, 1], [], []>} : vector<14x84xbf16>, vector<84x160xbf16>, vector<14x160xf32> -> vector<14x160xf32>
    %39 = arith.addf %29, %37 : vector<14x160xf32>
    %40 = arith.addf %30, %38 : vector<14x160xf32>
    %c4_36 = arith.constant 4 : index
    %c0_37 = arith.constant 0 : index
    %c0_38 = arith.constant 0 : index
    %41 = vector.load %arg2[%c4_36, %c0_37, %c0_38] : memref<5x84x160xbf16, #tpu.memory_space<vmem>>, vector<1x84x160xbf16>
    %42 = vector.shape_cast %41 : vector<1x84x160xbf16> to vector<84x160xbf16>
    %c4_39 = arith.constant 4 : index
    %c0_40 = arith.constant 0 : index
    %43 = tpu.strided_load %arg1[%c4_39, %c0_40] {strides = array<i32: 2, 1>} : memref<32x84xf32, #tpu.memory_space<vmem>>, vector<14x84xf32>
    %44 = arith.truncf %43 : vector<14x84xf32> to vector<14x84xbf16>
    %c5 = arith.constant 5 : index
    %c0_41 = arith.constant 0 : index
    %45 = tpu.strided_load %arg1[%c5, %c0_41] {strides = array<i32: 2, 1>} : memref<32x84xf32, #tpu.memory_space<vmem>>, vector<14x84xf32>
    %46 = arith.truncf %45 : vector<14x84xf32> to vector<14x84xbf16>
    %cst_42 = arith.constant dense<0.000000e+00> : vector<14x160xf32>
    %47 = tpu.matmul %44, %42, %cst_42 {dimension_numbers = #tpu.dot_dimension_numbers<[1], [0], [0], [1], [0, 0, 1, 1], [], []>} : vector<14x84xbf16>, vector<84x160xbf16>, vector<14x160xf32> -> vector<14x160xf32>
    %cst_43 = arith.constant dense<0.000000e+00> : vector<14x160xf32>
    %48 = tpu.matmul %46, %42, %cst_43 {dimension_numbers = #tpu.dot_dimension_numbers<[1], [0], [0], [1], [0, 0, 1, 1], [], []>} : vector<14x84xbf16>, vector<84x160xbf16>, vector<14x160xf32> -> vector<14x160xf32>
    %49 = arith.addf %39, %47 : vector<14x160xf32>
    %50 = arith.addf %40, %48 : vector<14x160xf32>
    %51 = arith.maximumf %49, %50 : vector<14x160xf32>
    %52 = vector.broadcast %0 : vector<1x160xf32> to vector<14x160xf32>
    %53 = arith.addf %51, %52 : vector<14x160xf32>
    %cst_44 = arith.constant 0.000000e+00 : f32
    %54 = vector.broadcast %cst_44 : f32 to vector<14x160xf32>
    %55 = arith.maximumf %53, %54 : vector<14x160xf32>
    %56 = arith.truncf %55 : vector<14x160xf32> to vector<14x160xbf16>
    %cst_45 = arith.constant dense<0.000000e+00> : vector<14x80xf32>
    %57 = tpu.matmul %56, %1, %cst_45 {dimension_numbers = #tpu.dot_dimension_numbers<[1], [0], [0], [1], [0, 0, 1, 1], [], []>} : vector<14x160xbf16>, vector<160x80xbf16>, vector<14x80xf32> -> vector<14x80xf32>
    %cst_46 = arith.constant dense<0.000000e+00> : vector<14x80xf32>
    %58 = tpu.matmul %56, %2, %cst_46 {dimension_numbers = #tpu.dot_dimension_numbers<[1], [0], [0], [1], [0, 0, 1, 1], [], []>} : vector<14x160xbf16>, vector<160x80xbf16>, vector<14x80xf32> -> vector<14x80xf32>
    %59 = arith.maximumf %57, %58 : vector<14x80xf32>
    %c0_47 = arith.constant 0 : index
    %c0_48 = arith.constant 0 : index
    %60 = vector.load %arg13[%c0_47, %c0_48] : memref<16x80xf32, #tpu.memory_space<vmem>>, vector<14x80xf32>
    tpu.vector_store %arg13[%c0_47, %c0_48], %59 {strides = array<i32>} : memref<16x80xf32, #tpu.memory_space<vmem>>, vector<14x80xf32>,
    %c0_49 = arith.constant 0 : index
    %c0_50 = arith.constant 0 : index
    %61 = tpu.strided_load %arg13[%c0_49, %c0_50] {strides = array<i32: 8, 1>} : memref<16x80xf32, #tpu.memory_space<vmem>>, vector<2x80xf32>
    %62 = arith.truncf %61 : vector<2x80xf32> to vector<2x80xbf16>
    %c0_51 = arith.constant 0 : index
    %c0_52 = arith.constant 0 : index
    %c0_53 = arith.constant 0 : index
    %63 = vector.load %arg6[%c0_51, %c0_52, %c0_53] : memref<5x80x120xbf16, #tpu.memory_space<vmem>>, vector<1x80x120xbf16>
    %64 = vector.shape_cast %63 : vector<1x80x120xbf16> to vector<80x120xbf16>
    %cst_54 = arith.constant dense<0.000000e+00> : vector<2x120xf32>
    %65 = tpu.matmul %62, %64, %cst_54 {dimension_numbers = #tpu.dot_dimension_numbers<[1], [0], [0], [1], [0, 0, 1, 1], [], []>} : vector<2x80xbf16>, vector<80x120xbf16>, vector<2x120xf32> -> vector<2x120xf32>
    %c1_55 = arith.constant 1 : index
    %c0_56 = arith.constant 0 : index
    %66 = tpu.strided_load %arg13[%c1_55, %c0_56] {strides = array<i32: 8, 1>} : memref<16x80xf32, #tpu.memory_space<vmem>>, vector<2x80xf32>
    %67 = arith.truncf %66 : vector<2x80xf32> to vector<2x80xbf16>
    %c1_57 = arith.constant 1 : index
    %c0_58 = arith.constant 0 : index
    %c0_59 = arith.constant 0 : index
    %68 = vector.load %arg6[%c1_57, %c0_58, %c0_59] : memref<5x80x120xbf16, #tpu.memory_space<vmem>>, vector<1x80x120xbf16>
    %69 = vector.shape_cast %68 : vector<1x80x120xbf16> to vector<80x120xbf16>
    %cst_60 = arith.constant dense<0.000000e+00> : vector<2x120xf32>
    %70 = tpu.matmul %67, %69, %cst_60 {dimension_numbers = #tpu.dot_dimension_numbers<[1], [0], [0], [1], [0, 0, 1, 1], [], []>} : vector<2x80xbf16>, vector<80x120xbf16>, vector<2x120xf32> -> vector<2x120xf32>
    %71 = arith.addf %65, %70 : vector<2x120xf32>
    %c2_61 = arith.constant 2 : index
    %c0_62 = arith.constant 0 : index
    %72 = tpu.strided_load %arg13[%c2_61, %c0_62] {strides = array<i32: 8, 1>} : memref<16x80xf32, #tpu.memory_space<vmem>>, vector<2x80xf32>
    %73 = arith.truncf %72 : vector<2x80xf32> to vector<2x80xbf16>
    %c2_63 = arith.constant 2 : index
    %c0_64 = arith.constant 0 : index
    %c0_65 = arith.constant 0 : index
    %74 = vector.load %arg6[%c2_63, %c0_64, %c0_65] : memref<5x80x120xbf16, #tpu.memory_space<vmem>>, vector<1x80x120xbf16>
    %75 = vector.shape_cast %74 : vector<1x80x120xbf16> to vector<80x120xbf16>
    %cst_66 = arith.constant dense<0.000000e+00> : vector<2x120xf32>
    %76 = tpu.matmul %73, %75, %cst_66 {dimension_numbers = #tpu.dot_dimension_numbers<[1], [0], [0], [1], [0, 0, 1, 1], [], []>} : vector<2x80xbf16>, vector<80x120xbf16>, vector<2x120xf32> -> vector<2x120xf32>
    %77 = arith.addf %71, %76 : vector<2x120xf32>
    %c3_67 = arith.constant 3 : index
    %c0_68 = arith.constant 0 : index
    %78 = tpu.strided_load %arg13[%c3_67, %c0_68] {strides = array<i32: 8, 1>} : memref<16x80xf32, #tpu.memory_space<vmem>>, vector<2x80xf32>
    %79 = arith.truncf %78 : vector<2x80xf32> to vector<2x80xbf16>
    %c3_69 = arith.constant 3 : index
    %c0_70 = arith.constant 0 : index
    %c0_71 = arith.constant 0 : index
    %80 = vector.load %arg6[%c3_69, %c0_70, %c0_71] : memref<5x80x120xbf16, #tpu.memory_space<vmem>>, vector<1x80x120xbf16>
    %81 = vector.shape_cast %80 : vector<1x80x120xbf16> to vector<80x120xbf16>
    %cst_72 = arith.constant dense<0.000000e+00> : vector<2x120xf32>
    %82 = tpu.matmul %79, %81, %cst_72 {dimension_numbers = #tpu.dot_dimension_numbers<[1], [0], [0], [1], [0, 0, 1, 1], [], []>} : vector<2x80xbf16>, vector<80x120xbf16>, vector<2x120xf32> -> vector<2x120xf32>
    %83 = arith.addf %77, %82 : vector<2x120xf32>
    %c4_73 = arith.constant 4 : index
    %c0_74 = arith.constant 0 : index
    %84 = tpu.strided_load %arg13[%c4_73, %c0_74] {strides = array<i32: 8, 1>} : memref<16x80xf32, #tpu.memory_space<vmem>>, vector<2x80xf32>
    %85 = arith.truncf %84 : vector<2x80xf32> to vector<2x80xbf16>
    %c4_75 = arith.constant 4 : index
    %c0_76 = arith.constant 0 : index
    %c0_77 = arith.constant 0 : index
    %86 = vector.load %arg6[%c4_75, %c0_76, %c0_77] : memref<5x80x120xbf16, #tpu.memory_space<vmem>>, vector<1x80x120xbf16>
    %87 = vector.shape_cast %86 : vector<1x80x120xbf16> to vector<80x120xbf16>
    %cst_78 = arith.constant dense<0.000000e+00> : vector<2x120xf32>
    %88 = tpu.matmul %85, %87, %cst_78 {dimension_numbers = #tpu.dot_dimension_numbers<[1], [0], [0], [1], [0, 0, 1, 1], [], []>} : vector<2x80xbf16>, vector<80x120xbf16>, vector<2x120xf32> -> vector<2x120xf32>
    %89 = arith.addf %83, %88 : vector<2x120xf32>
    %c0_79 = arith.constant 0 : index
    %c0_80 = arith.constant 0 : index
    %90 = vector.load %arg7[%c0_79, %c0_80] : memref<1x120xf32, #tpu.memory_space<vmem>>, vector<1x120xf32>
    %91 = vector.broadcast %90 : vector<1x120xf32> to vector<2x120xf32>
    %92 = arith.addf %89, %91 : vector<2x120xf32>
    %93 = arith.truncf %92 : vector<2x120xf32> to vector<2x120xbf16>
    %c0_81 = arith.constant 0 : index
    %c0_82 = arith.constant 0 : index
    %94 = vector.load %arg8[%c0_81, %c0_82] : memref<120x84xbf16, #tpu.memory_space<vmem>>, vector<120x84xbf16>
    %cst_83 = arith.constant dense<0.000000e+00> : vector<2x84xf32>
    %95 = tpu.matmul %93, %94, %cst_83 {dimension_numbers = #tpu.dot_dimension_numbers<[1], [0], [0], [1], [0, 0, 1, 1], [], []>} : vector<2x120xbf16>, vector<120x84xbf16>, vector<2x84xf32> -> vector<2x84xf32>
    %c0_84 = arith.constant 0 : index
    %c0_85 = arith.constant 0 : index
    %96 = vector.load %arg9[%c0_84, %c0_85] : memref<1x84xf32, #tpu.memory_space<vmem>>, vector<1x84xf32>
    %97 = vector.broadcast %96 : vector<1x84xf32> to vector<2x84xf32>
    %98 = arith.addf %95, %97 : vector<2x84xf32>
    %99 = arith.truncf %98 : vector<2x84xf32> to vector<2x84xbf16>
    %c0_86 = arith.constant 0 : index
    %c0_87 = arith.constant 0 : index
    %100 = vector.load %arg10[%c0_86, %c0_87] : memref<84x10xbf16, #tpu.memory_space<vmem>>, vector<84x10xbf16>
    %cst_88 = arith.constant dense<0.000000e+00> : vector<2x10xf32>
    %101 = tpu.matmul %99, %100, %cst_88 {dimension_numbers = #tpu.dot_dimension_numbers<[1], [0], [0], [1], [0, 0, 1, 1], [], []>} : vector<2x84xbf16>, vector<84x10xbf16>, vector<2x10xf32> -> vector<2x10xf32>
    %c0_89 = arith.constant 0 : index
    %c0_90 = arith.constant 0 : index
    %102 = vector.load %arg11[%c0_89, %c0_90] : memref<1x10xf32, #tpu.memory_space<vmem>>, vector<1x10xf32>
    %103 = vector.broadcast %102 : vector<1x10xf32> to vector<2x10xf32>
    %104 = arith.addf %101, %103 : vector<2x10xf32>
    %c0_91 = arith.constant 0 : index
    %c0_92 = arith.constant 0 : index
    %105 = vector.load %arg12[%c0_91, %c0_92] : memref<2x10xf32, #tpu.memory_space<vmem>>, vector<2x10xf32>
    tpu.vector_store %arg12[%c0_91, %c0_92], %104 {strides = array<i32>} : memref<2x10xf32, #tpu.memory_space<vmem>>, vector<2x10xf32>,
    return
  }
  func.func @transform_0(%arg0: i32) -> (i32, i32) {
    %c0_i32 = arith.constant 0 : i32
    %c0_i32_0 = arith.constant 0 : i32
    return %arg0, %c0_i32 : i32, i32
  }
  func.func @transform_1(%arg0: i32) -> (i32, i32, i32) {
    %c0_i32 = arith.constant 0 : i32
    %c0_i32_0 = arith.constant 0 : i32
    %c0_i32_1 = arith.constant 0 : i32
    %c0_i32_2 = arith.constant 0 : i32
    return %c0_i32, %c0_i32_0, %c0_i32_1 : i32, i32, i32
  }
  func.func @transform_2(%arg0: i32) -> (i32, i32) {
    %c0_i32 = arith.constant 0 : i32
    %c0_i32_0 = arith.constant 0 : i32
    %c0_i32_1 = arith.constant 0 : i32
    return %c0_i32, %c0_i32_0 : i32, i32
  }
  func.func @transform_3(%arg0: i32) -> (i32, i32) {
    %c0_i32 = arith.constant 0 : i32
    %c0_i32_0 = arith.constant 0 : i32
    %c0_i32_1 = arith.constant 0 : i32
    return %c0_i32, %c0_i32_0 : i32, i32
  }
  func.func @transform_4(%arg0: i32) -> (i32, i32) {
    %c0_i32 = arith.constant 0 : i32
    %c0_i32_0 = arith.constant 0 : i32
    %c0_i32_1 = arith.constant 0 : i32
    return %c0_i32, %c0_i32_0 : i32, i32
  }
  func.func @transform_5(%arg0: i32) -> (i32, i32, i32) {
    %c0_i32 = arith.constant 0 : i32
    %c0_i32_0 = arith.constant 0 : i32
    %c0_i32_1 = arith.constant 0 : i32
    %c0_i32_2 = arith.constant 0 : i32
    return %c0_i32, %c0_i32_0, %c0_i32_1 : i32, i32, i32
  }
  func.func @transform_6(%arg0: i32) -> (i32, i32) {
    %c0_i32 = arith.constant 0 : i32
    %c0_i32_0 = arith.constant 0 : i32
    %c0_i32_1 = arith.constant 0 : i32
    return %c0_i32, %c0_i32_0 : i32, i32
  }
  func.func @transform_7(%arg0: i32) -> (i32, i32) {
    %c0_i32 = arith.constant 0 : i32
    %c0_i32_0 = arith.constant 0 : i32
    %c0_i32_1 = arith.constant 0 : i32
    return %c0_i32, %c0_i32_0 : i32, i32
  }
  func.func @transform_8(%arg0: i32) -> (i32, i32) {
    %c0_i32 = arith.constant 0 : i32
    %c0_i32_0 = arith.constant 0 : i32
    %c0_i32_1 = arith.constant 0 : i32
    return %c0_i32, %c0_i32_0 : i32, i32
  }
  func.func @transform_9(%arg0: i32) -> (i32, i32) {
    %c0_i32 = arith.constant 0 : i32
    %c0_i32_0 = arith.constant 0 : i32
    %c0_i32_1 = arith.constant 0 : i32
    return %c0_i32, %c0_i32_0 : i32, i32
  }
  func.func @transform_10(%arg0: i32) -> (i32, i32) {
    %c0_i32 = arith.constant 0 : i32
    %c0_i32_0 = arith.constant 0 : i32
    %c0_i32_1 = arith.constant 0 : i32
    return %c0_i32, %c0_i32_0 : i32, i32
  }
  func.func @transform_11(%arg0: i32) -> (i32, i32) {
    %c0_i32 = arith.constant 0 : i32
    %c0_i32_0 = arith.constant 0 : i32
    return %arg0, %c0_i32 : i32, i32
  }
}

</mosaic_0001>

<bundles_post_ra>
// kernel: cnn_forward.2
= control target key start
LH: loop header
LB: loop body
LE: loop exit
PB: predicated region body
PF: predicated region fallthrough
CT: control target
= control target key end

     0   :  { %10 = vsyncpa [#allocation3], 0  ;;  %s1762_s0 = inlined_call_operand.vmem [shape: f32[64,32], index: 0, kind: input, shape index: {}]   ;;  %s1763_s1 = inlined_call_operand.vmem [shape: bf16[5,32,168], index: 1, kind: input, shape index: {}]   ;;  %s1764_s2 = inlined_call_operand.vmem [shape: f32[1,168], index: 2, kind: input, shape index: {}]   ;;  %s1765_s3 = inlined_call_operand.hbm [shape: bf16[168,84], index: 3, kind: input, shape index: {}]   ;;  %s1766_s4 = inlined_call_operand.hbm [shape: bf16[168,84], index: 4, kind: input, shape index: {}]   ;;  %s1767_s5 = inlined_call_operand.vmem [shape: f32[32,84], index: 5, kind: output, shape index: {}]  }
   0x1   :  { %11 = vsyncpa [#allocation5], 0  ;;  %s1487_s18 = smov 0  }
   0x2 LB: > { %s175_s21 = sshll.u32 %s1765_s3, 4  ;;  %s1496_s22 = sadd.s32 4294967295, %s1450_s18   ;;  %s1450_s18 = sphi %s1487_s18, %s17_s18   ;;  %s176_s21 = int_to_ptr.hbm [resolvable:$true] %s175_s21 }
   0x3   : > { %p1082_p0 = scmp.ge.s32.totalorder %s1450_s18, 1  ;;  %p158_p1 = scmp.lt.s32.totalorder %s1450_s18, 3 }
   0x4   : > { %p1359_p2 = scmp.eq.s32.totalorder %s1496_s22, 0  ;;  %s1452_s24 = smov [#allocation2]  }
   0x5   : > { %p1501_p3 = pnand %p1082_p0, %p158_p1  ;;  %s177_s25 = sshll.u32 %s1452_s24, 4  ;;  %s178_s25 = int_to_ptr.vmem [resolvable:$true] %s177_s25 }
   0x6   : > { %s189_s28 = sshll.u32 %s1766_s4, 4  ;;  %s1453_s29 = smov [#allocation4]   ;;  %s190_s28 = int_to_ptr.hbm [resolvable:$true] %s189_s28 }
   0x7   : > { %p1352_p4 = pneg %p1501_p3  ;;  %s191_s30 = sshll.u32 %s1453_s29, 4  ;;  %s192_s30 = int_to_ptr.vmem [resolvable:$true] %s191_s30 }
   0x8   : > { %s1454_s6 = smov 64   ;;  %s1455_s7 = smov 4  }
   0x9   : > { %p1353_p5 = pnand %p1359_p2, %p1352_p4  ;;  %216 = sbr.rel (%p1501_p3) target bundleno = 390 (0x186), region = 40 }
   0xb   : > { %1355 = dma.hbm_to_vmem [thread:$0]  (!%p1353_p5), %s176_s21, 1344, %s178_s25, [#allocation3], %s1454_s6, %s1454_s6, %s1455_s7  }
   0xc   : > { %1358 = dma.hbm_to_vmem [thread:$0]  (!%p1353_p5), %s190_s28, 1344, %s192_s30, [#allocation5], %s1454_s6, %s1454_s6, %s1455_s7  }
   0xe   : > { %1441 = dma.done.wait (%p1359_p2), [#allocation3], 1344  }
   0xf   : > { %1443 = vsyncadd (%p1359_p2), [#allocation3], 4294965952 }
  0x10   : > { %1445 = dma.done.wait (%p1359_p2), [#allocation5], 1344  }
  0x11   : > { %1447 = vsyncadd (%p1359_p2), [#allocation5], 4294965952  ;;  %s1089_s8 = sshll.u32 %s1496_s22, 2  ;;  %v1112_v0 = vld [vmem:[%s1763_s1 + $0x30] sm:$0xf]  ;;  %vm349_vm0 = vcmask 261120  }
  0x12   : > { %p251_p6 = scmp.lt.s32.totalorder %s1089_s8, 7  ;;  %v1331_v1 = vld [vmem:[%s1763_s1 + $0x34] sm:$0xf0]  ;;  %v1330_v2 = vld [vmem:[%s1763_s1 + $0x34] sm:$0xf]  ;;  %vm868_vm1 = vcmask 1043456  }
  0x13   : > { %v1113_v3 = vor.u32 %v1331_v1, %v1112_v0  ;;  %v1114_v4 = vld [vmem:[%s1763_s1 + $0x38] sm:$0xf0]  ;;  %v1104_v5 = vld [vmem:[%s1763_s1 + $0x20] sm:$0xf]  ;;  %v1329_v6 = vld [vmem:[%s1763_s1 + $0x24] sm:$0xf0] }
  0x14   : > { %s1770_s8 = smov (!%p251_p6, %s1089_s8), 7  ;;  %v1117_v7 = vor.u32 %v1330_v2, %v1114_v4  ;;  %v1328_v8 = vld [vmem:[%s1763_s1 + $0x24] sm:$0xf]  ;;  %v1106_v9 = vld [vmem:[%s1763_s1 + $0x28] sm:$0xf0]  ;;  %v1105_v11 = vor.u32 %v1329_v6, %v1104_v5  ;;  %vm864_vm2 = vcmask 326656  }
  0x15   : > { %s1090_s9 = sshll.u32 %s1770_s8, 3  ;;  %359 = vmatpush.bf16.msra.mxu0 %v1113_v3  ;;  %390 = vmatpush.bf16.msra.mxu2 %v1113_v3  ;;  %v1109_v14 = vor.u32 %v1328_v8, %v1106_v9  ;;  %v1132_v16 = vld [vmem:[%s1763_s1 + $0x10] sm:$0xf]  ;;  %v1327_v17 = vld [vmem:[%s1763_s1 + $0x14] sm:$0xf0]  ;;  %s1091_s30 = sshll.u32 %s1496_s22, 1 }
  0x16   : > { %s1526_s12 = scalar_lea.vmem %s1762_s0, %s1090_s9  ;;  %373 = vmatpush.bf16.msra.mxu1 %v1117_v7  ;;  %404 = vmatpush.bf16.msra.mxu3 %v1117_v7  ;;  %v1326_v18 = vld [vmem:[%s1763_s1 + $0x14] sm:$0xf]  ;;  %v1134_v19 = vld [vmem:[%s1763_s1 + $0x18] sm:$0xf0]  ;;  %v1133_v22 = vor.u32 %v1327_v17, %v1132_v16  ;;  %v1124_v24 = vld [vmem:[%s1763_s1] sm:$0xf] }
  0x17   : > { %v1094_v10 = vld [vmem:[%s1526_s12 + $0x1] ss:$2 sm:$0xff]  ;;  %v1095_v12 = vld [vmem:[%s1526_s12 + $0x11] ss:$2 sm:$0x3f]  ;;  %v1137_v23 = vor.u32 %v1326_v18, %v1134_v19  ;;  %p257_p7 = scmp.lt.s32.totalorder %s1091_s30, 3 }
  0x18   : > { %v1100_v13 = vld [vmem:[%s1526_s12 + $0x2] ss:$2 sm:$0xff]  ;;  %v1101_v15 = vld [vmem:[%s1526_s12 + $0x12] ss:$2 sm:$0x3f]  ;;  %v1568_v20 = vpack.c.bf16 %v1095_v12, %v1094_v10  ;;  %vm996_vm3 = vcmask 687104  }
  0x19   : > { %v1570_v21 = vpack.c.bf16 %v1101_v15, %v1100_v13  ;;  %v1325_v25 = vld [vmem:[%s1763_s1 + $0x4] sm:$0xf0]  ;;  %v1324_v26 = vld [vmem:[%s1763_s1 + $0x4] sm:$0xf]  ;;  %360 = vmatpush.bf16.msra.mxu0 %v1105_v11  ;;  %391 = vmatpush.bf16.msra.mxu2 %v1105_v11  ;;  %v1126_v27 = vld [vmem:[%s1763_s1 + $0x8] sm:$0xf0] }
  0x1a   : > { %v1158_v28 = vld [vmem:[%s1763_s1 + $0x50] sm:$0xf]  ;;  %374 = vmatpush.bf16.msra.mxu1 %v1109_v14  ;;  %405 = vmatpush.bf16.msra.mxu3 %v1109_v14  ;;  %v1335_v29 = vld [vmem:[%s1763_s1 + $0x54] sm:$0xf0]  ;;  %v1125_v30 = vor.u32 %v1325_v25, %v1124_v24  ;;  %v1129_v31 = vor.u32 %v1324_v26, %v1126_v27  ;;  %v1334_v32 = vld [vmem:[%s1763_s1 + $0x54] sm:$0xf] }
  0x1b   : > { %v1160_v33 = vld [vmem:[%s1763_s1 + $0x58] sm:$0xf0]  ;;  %v1159_v34 = vor.u32 %v1335_v29, %v1158_v28  ;;  %v1150_v36 = vld [vmem:[%s1763_s1 + $0x40] sm:$0xf]  ;;  %v1333_v37 = vld [vmem:[%s1763_s1 + $0x44] sm:$0xf0] }
  0x1c   : > { %1118 = vmatmul.msk.bf16.vlgmr.msra.gmra.mxu0 %vm349_vm0, %v1568_v20  ;;  %1120 = vmatmul.msk.bf16.vlgmr.msra.gmra.mxu2 %vm349_vm0, %v1570_v21  ;;  %v1163_v35 = vor.u32 %v1334_v32, %v1160_v33  ;;  %v1332_v38 = vld [vmem:[%s1763_s1 + $0x44] sm:$0xf]  ;;  %v1152_v39 = vld [vmem:[%s1763_s1 + $0x48] sm:$0xf0]  ;;  %v1151_v40 = vor.u32 %v1333_v37, %v1150_v36  ;;  %v1184_v44 = vld [vmem:[%s1763_s1 + $0x70] sm:$0xf] }
  0x1d   : > { %469 = vmatpush.bf16.msrb.mxu2 %v1133_v22  ;;  %1119 = vmatmul.msk.bf16.vlgmr.msra.gmra.mxu1 %vm349_vm0, %v1568_v20  ;;  %v1155_v41 = vor.u32 %v1332_v38, %v1152_v39  ;;  %v310_v42 = vld [vmem:[%s1526_s12] ss:$2 sm:$0xff]  ;;  %v1093_v43 = vld [vmem:[%s1526_s12 + $0x10] ss:$2 sm:$0x3f]  ;;  %s1772_s30 = smov (!%p257_p7, %s1091_s30), 3 }
  0x1e   : > { %483 = vmatpush.bf16.msrb.mxu3 %v1137_v23  ;;  %441 = vmatpush.bf16.msrb.mxu0 %v1133_v22  ;;  %v1339_v45 = vld [vmem:[%s1763_s1 + $0x74] sm:$0xf0]  ;;  %v1338_v46 = vld [vmem:[%s1763_s1 + $0x74] sm:$0xf]  ;;  %v1186_v47 = vld [vmem:[%s1763_s1 + $0x78] sm:$0xf0]  ;;  %v313_v48 = vpack.c.bf16 %v1093_v43, %v310_v42 }
  0x1f   : > { %1121 = vmatmul.msk.bf16.vlgmr.msra.gmra.mxu3 %vm349_vm0, %v1570_v21  ;;  %455 = vmatpush.bf16.msrb.mxu1 %v1137_v23  ;;  %v1185_v49 = vor.u32 %v1339_v45, %v1184_v44  ;;  %v1189_v50 = vor.u32 %v1338_v46, %v1186_v47  ;;  %v1176_v51 = vld [vmem:[%s1763_s1 + $0x60] sm:$0xf]  ;;  %v1337_v52 = vld [vmem:[%s1763_s1 + $0x64] sm:$0xf0]  ;;  %v1336_v53 = vld [vmem:[%s1763_s1 + $0x64] sm:$0xf] }
  0x20   : > { %v1178_v54 = vld [vmem:[%s1763_s1 + $0x68] sm:$0xf0]  ;;  %v1177_v55 = vor.u32 %v1337_v52, %v1176_v51  ;;  %v1147_v58 = vld [vmem:[%s1526_s12 + $0x13] ss:$2 sm:$0x3f]  ;;  %v1308_v38 = vld [vmem:[#allocation2 + $0x20] sm:$0xff] }
  0x21   : > { %470 = vmatpush.bf16.msrb.mxu2 %v1125_v30  ;;  %v1181_v56 = vor.u32 %v1336_v53, %v1178_v54  ;;  %v1146_v57 = vld [vmem:[%s1526_s12 + $0x3] ss:$2 sm:$0xff]  ;;  %v1343_v60 = vld [vmem:[%s1763_s1 + $0x94] sm:$0xf0]  ;;  %v1342_v61 = vld [vmem:[%s1763_s1 + $0x94] sm:$0xf] }
  0x22   : > { %484 = vmatpush.bf16.msrb.mxu3 %v1129_v31  ;;  %442 = vmatpush.bf16.msrb.mxu0 %v1125_v30  ;;  %v1210_v59 = vld [vmem:[%s1763_s1 + $0x90] sm:$0xf]  ;;  %v1212_v62 = vld [vmem:[%s1763_s1 + $0x98] sm:$0xf0]  ;;  %v500_v63 = vpack.c.bf16 %v1147_v58, %v1146_v57  ;;  %v1202_v2 = vld [vmem:[%s1763_s1 + $0x80] sm:$0xf] }
  0x23   : > { %456 = vmatpush.bf16.msrb.mxu1 %v1129_v31  ;;  %v1211_v0 = vor.u32 %v1343_v60, %v1210_v59  ;;  %v1215_v1 = vor.u32 %v1342_v61, %v1212_v62  ;;  %v1341_v3 = vld [vmem:[%s1763_s1 + $0x84] sm:$0xf0]  ;;  %v1340_v4 = vld [vmem:[%s1763_s1 + $0x84] sm:$0xf]  ;;  %v1204_v5 = vld [vmem:[%s1763_s1 + $0x88] sm:$0xf0] }
  0x24   : > { %v1203_v6 = vor.u32 %v1341_v3, %v1202_v2  ;;  %v1207_v7 = vor.u32 %v1340_v4, %v1204_v5  ;;  %v1172_v8 = vld [vmem:[%s1526_s12 + $0x4] ss:$2 sm:$0xff]  ;;  %v1173_v9 = vld [vmem:[%s1526_s12 + $0x14] ss:$2 sm:$0x3f]  ;;  %s1092_s6 = sshll.u32 %s1772_s30, 3 }
  0x25   : > { %558 = vmatpush.bf16.msra.mxu2 %v1159_v34  ;;  %v597_v10 = vpack.c.bf16 %v1173_v9, %v1172_v8  ;;  %v1198_v11 = vld [vmem:[%s1526_s12 + $0x5] ss:$2 sm:$0xff]  ;;  %v1199_v12 = vld [vmem:[%s1526_s12 + $0x15] ss:$2 sm:$0x3f]  ;;  %s260_s9 = scalar_lea.vmem %s1767_s5, %s1092_s6  ;;  %vm1000_vm4 = vcmask 680960  }
  0x26   : > { %572 = vmatpush.bf16.msra.mxu3 %v1163_v35  ;;  %527 = vmatpush.bf16.msra.mxu0 %v1159_v34  ;;  %v694_v13 = vpack.c.bf16 %v1199_v12, %v1198_v11  ;;  %v1311_v28 = vld [vmem:[#allocation2 + $0x38] sm:$0xff]  ;;  %v1321_v29 = vld [vmem:[#allocation4 + $0x38] sm:$0xff]  ;;  %v1320_v31 = vld [vmem:[#allocation4 + $0x30] sm:$0xff]  ;;  %vm998_vm5 = vcmask 685056  }
  0x27   : > { %541 = vmatpush.bf16.msra.mxu1 %v1163_v35  ;;  %v1310_v30 = vld [vmem:[#allocation2 + $0x30] sm:$0xff]  ;;  %v1309_v36 = vld [vmem:[#allocation2 + $0x28] sm:$0xff]  ;;  %v1319_v37 = vld [vmem:[#allocation4 + $0x28] sm:$0xff] }
  0x28   : > { %v1318_v39 = vld [vmem:[#allocation4 + $0x20] sm:$0xff]  ;;  %v305_v44 = vld [vmem:[#allocation4 + $0x50] sm:$0xf]  ;;  %v1317_v46 = vld [vmem:[#allocation4 + $0x18] sm:$0xff] }
  0x29   : > { %559 = vmatpush.bf16.msra.mxu2 %v1151_v40  ;;  %v1307_v45 = vld [vmem:[#allocation2 + $0x18] sm:$0xff]  ;;  %v941_v47 = vunpack.c.l.b16 %v305_v44  ;;  %v1306_v51 = vld [vmem:[#allocation2 + $0x10] sm:$0xff]  ;;  %v1316_v53 = vld [vmem:[#allocation4 + $0x10] sm:$0xff] }
  0x2a   : > { %573 = vmatpush.bf16.msra.mxu3 %v1155_v41  ;;  %528 = vmatpush.bf16.msra.mxu0 %v1151_v40  ;;  %v1323_v60 = vld [vmem:[#allocation4 + $0x48] sm:$0xff]  ;;  %v1305_v61 = vld [vmem:[#allocation2 + $0x8] sm:$0xff]  ;;  %v1314_v4 = vld [vmem:[#allocation4] sm:$0xff] }
  0x2b   : > { %542 = vmatpush.bf16.msra.mxu1 %v1155_v41  ;;  %v1313_v62 = vld [vmem:[#allocation2 + $0x48] sm:$0xff]  ;;  %v1312_v2 = vld [vmem:[#allocation2 + $0x40] sm:$0xff] }
  0x2c   : > { %1138 = vmatmul.msk.bf16.vlgmr.msrb.gmra.mxu0 %vm349_vm0, %v313_v48  ;;  %1140 = vmatmul.msk.bf16.vlgmr.msrb.gmra.mxu2 %vm349_vm0, %v1568_v20 }
  0x2d   : > { %1139 = vmatmul.msk.bf16.vlgmr.msrb.gmra.mxu1 %vm349_vm0, %v313_v48  ;;  %655 = vmatpush.bf16.msrb.mxu2 %v1185_v49  ;;  %v284_v48 = vld [vmem:[#allocation2 + $0x50] sm:$0xf] }
  0x2e   : > { %624 = vmatpush.bf16.msrb.mxu0 %v1185_v49  ;;  %v842_v49 = vunpack.c.l.b16 %v284_v48 }
  0x2f   : > { %1141 = vmatmul.msk.bf16.vlgmr.msrb.gmra.mxu3 %vm349_vm0, %v1568_v20  ;;  %638 = vmatpush.bf16.msrb.mxu1 %v1189_v50 }
  0x30   : > { %669 = vmatpush.bf16.msrb.mxu3 %v1189_v50  ;;  %v952_v50 = vpack.c.b16 %v941_v47, %v941_v47  ;;  %v853_v52 = vpack.c.b16 %v842_v49, %v842_v49 }
  0x31   : > { %656 = vmatpush.bf16.msrb.mxu2 %v1177_v55 }
  0x32   : > { %625 = vmatpush.bf16.msrb.mxu0 %v1177_v55  ;;  %v964_v55 = vsel %vm868_vm1, %v952_v50, 0  ;;  %v870_v57 = vsel %vm868_vm1, %v853_v52, 0 }
  0x33   : > { %639 = vmatpush.bf16.msrb.mxu1 %v1181_v56 }
  0x34   : > { %670 = vmatpush.bf16.msrb.mxu3 %v1181_v56 }
  0x3c   : > { %1164 = vmatmul.msk.bf16.vlgmr.msra.gmra.mxu0 %vm349_vm0, %v1570_v21  ;;  %1166 = vmatmul.msk.bf16.vlgmr.msra.gmra.mxu2 %vm349_vm0, %v500_v63 }
  0x3d   : > { %1165 = vmatmul.msk.bf16.vlgmr.msra.gmra.mxu1 %vm349_vm0, %v1570_v21  ;;  %752 = vmatpush.bf16.msra.mxu2 %v1211_v0 }
  0x3e   : > { %721 = vmatpush.bf16.msra.mxu0 %v1211_v0  ;;  %735 = vmatpush.bf16.msra.mxu1 %v1215_v1  ;;  %v1322_v0 = vld [vmem:[#allocation4 + $0x40] sm:$0xff] }
  0x3f   : > { %1167 = vmatmul.msk.bf16.vlgmr.msra.gmra.mxu3 %vm349_vm0, %v500_v63 }
  0x40   : > { %766 = vmatpush.bf16.msra.mxu3 %v1215_v1  ;;  %v1304_v1 = vld [vmem:[#allocation2] sm:$0xff] }
  0x41   : > { %753 = vmatpush.bf16.msra.mxu2 %v1203_v6 }
  0x42   : > { %722 = vmatpush.bf16.msra.mxu0 %v1203_v6  ;;  %736 = vmatpush.bf16.msra.mxu1 %v1207_v7 }
  0x44   : > { %767 = vmatpush.bf16.msra.mxu3 %v1207_v7 }
  0x4c   : > { %1190 = vmatmul.msk.bf16.vlgmr.msrb.gmra.mxu0 %vm349_vm0, %v500_v63  ;;  %1192 = vmatmul.msk.bf16.vlgmr.msrb.gmra.mxu2 %vm349_vm0, %v597_v10 }
  0x4d   : > { %1191 = vmatmul.msk.bf16.vlgmr.msrb.gmra.mxu1 %vm349_vm0, %v500_v63  ;;  %872 = vmatpush.bf16.msrb.mxu0 %v1311_v28  ;;  %v1315_v63 = vld [vmem:[#allocation4 + $0x8] sm:$0xff] }
  0x4e   : > { %966 = vmatpush.bf16.msrb.mxu2 %v1321_v29  ;;  %891 = vmatpush.bf16.msrb.mxu1 %v870_v57 }
  0x4f   : > { %1193 = vmatmul.msk.bf16.vlgmr.msrb.gmra.mxu3 %vm349_vm0, %v597_v10 }
  0x50   : > { %985 = vmatpush.bf16.msrb.mxu3 %v964_v55 }
  0x51   : > { %873 = vmatpush.bf16.msrb.mxu0 %v1310_v30 }
  0x52   : > { %967 = vmatpush.bf16.msrb.mxu2 %v1320_v31  ;;  %892 = vmatpush.bf16.msrb.mxu1 %v1313_v62 }
  0x54   : > { %986 = vmatpush.bf16.msrb.mxu3 %v1323_v60 }
  0x55   : > { %874 = vmatpush.bf16.msrb.mxu0 %v1309_v36 }
  0x56   : > { %968 = vmatpush.bf16.msrb.mxu2 %v1319_v37  ;;  %893 = vmatpush.bf16.msrb.mxu1 %v1312_v2 }
  0x58   : > { %987 = vmatpush.bf16.msrb.mxu3 %v1322_v0 }
  0x59   : > { %875 = vmatpush.bf16.msrb.mxu0 %v1308_v38 }
  0x5a   : > { %969 = vmatpush.bf16.msrb.mxu2 %v1318_v39 }
  0x5c   : > { %1216 = vmatmul.msk.bf16.vlgmr.msra.gmra.mxu0 %vm349_vm0, %v597_v10  ;;  %1218 = vmatmul.msk.bf16.vlgmr.msra.gmra.mxu2 %vm349_vm0, %v694_v13 }
  0x5d   : > { %1217 = vmatmul.msk.bf16.vlgmr.msra.gmra.mxu1 %vm349_vm0, %v597_v10  ;;  %876 = vmatpush.bf16.msrb.mxu0 %v1307_v45 }
  0x5e   : > { %970 = vmatpush.bf16.msrb.mxu2 %v1317_v46 }
  0x5f   : > { %1219 = vmatmul.msk.bf16.vlgmr.msra.gmra.mxu3 %vm349_vm0, %v694_v13 }
  0x61   : > { %877 = vmatpush.bf16.msrb.mxu0 %v1306_v51 }
  0x62   : > { %971 = vmatpush.bf16.msrb.mxu2 %v1316_v53 }
  0x65   : > { %878 = vmatpush.bf16.msrb.mxu0 %v1305_v61 }
  0x66   : > { %972 = vmatpush.bf16.msrb.mxu2 %v1315_v63 }
  0x69   : > { %879 = vmatpush.bf16.msrb.mxu0 %v1304_v1 }
  0x6a   : > { %973 = vmatpush.bf16.msrb.mxu2 %v1314_v4 }
  0x99   : > { %v1692_v14 = vpop.f32.mrf.mxu0 }
  0x9a   : > { %v1694_v15 = vpop.f32.mrf.mxu1 }
  0x9f   : > { %v1696_v16 = vpop.f32.mrf.mxu2 }
  0xa1   : > { %v1700_v18 = vpop.f32.mrf.mxu0 }
  0xa2   : > { %v1698_v17 = vpop.f32.mrf.mxu3  ;;  %v1702_v19 = vpop.f32.mrf.mxu1 }
  0xa7   : > { %v1704_v20 = vpop.f32.mrf.mxu2 }
  0xa9   : > { %v1708_v22 = vpop.f32.mrf.mxu0 }
  0xaa   : > { %v1706_v21 = vpop.f32.mrf.mxu3  ;;  %v1710_v23 = vpop.f32.mrf.mxu1  ;;  %v445_v10 = vadd.f32 %v1708_v22, %v1692_v14 }
  0xab   : > { %v459_v12 = vadd.f32 %v1710_v23, %v1694_v15 }
  0xaf   : > { %v1712_v24 = vpop.f32.mrf.mxu2 }
  0xb0   : > { %v473_v11 = vadd.f32 %v1712_v24, %v1696_v16 }
  0xb1   : > { %v1716_v26 = vpop.f32.mrf.mxu0 }
  0xb2   : > { %v1714_v25 = vpop.f32.mrf.mxu3  ;;  %v1718_v27 = vpop.f32.mrf.mxu1 }
  0xb3   : > { %v487_v13 = vadd.f32 %v1714_v25, %v1698_v17  ;;  %v447_v17 = vadd.f32 %v1716_v26, %v1700_v18 }
  0xb7   : > { %v1720_v32 = vpop.f32.mrf.mxu2 }
  0xb8   : > { %v475_v25 = vadd.f32 %v1720_v32, %v1704_v20 }
  0xb9   : > { %v1724_v34 = vpop.f32.mrf.mxu0 }
  0xba   : > { %v1722_v33 = vpop.f32.mrf.mxu3  ;;  %v1726_v35 = vpop.f32.mrf.mxu1  ;;  %v580_v29 = vadd.f32 %v1724_v34, %v445_v10  ;;  %v1456_v10 = vmov 0.0  }
  0xbb   : > { %v581_v36 = vadd.f32 %v1726_v35, %v459_v12  ;;  %v461_v35 = vadd.f32 %v1718_v27, %v1702_v19  ;;  %1001 = vst.msk [vmem:[%s260_s9 + $0xe] sm:$0x3] %vm1000_vm4, %v1456_v10 }
  0xbf   : > { %v561_v40 = vpop.f32.mrf.mxu2 }
  0xc0   : > { %v584_v30 = vadd.f32 %v561_v40, %v473_v11  ;;  %v489_v40 = vadd.f32 %v1722_v33, %v1706_v21 }
  0xc1   : > { %v1728_v42 = vpop.f32.mrf.mxu0 }
  0xc2   : > { %v575_v41 = vpop.f32.mrf.mxu3  ;;  %v1730_v43 = vpop.f32.mrf.mxu1  ;;  %v582_v47 = vadd.f32 %v1728_v42, %v447_v17 }
  0xc3   : > { %v585_v37 = vadd.f32 %v575_v41, %v487_v13  ;;  %v263_v41 = vld [vmem:[%s1764_s2] sm:$0x3]  ;;  %v583_v18 = vadd.f32 %v1730_v43, %v461_v35 }
  0xc4   : > { %v787_v50 = vperm.slane %v263_v41, 0  ;;  %v788_v52 = vperm.slane %v263_v41, 1 }
  0xc7   : > { %v563_v54 = vpop.f32.mrf.mxu2 }
  0xc8   : > { %v586_v48 = vadd.f32 %v563_v54, %v475_v25 }
  0xc9   : > { %v627_v58 = vpop.f32.mrf.mxu0 }
  0xca   : > { %v577_v56 = vpop.f32.mrf.mxu3  ;;  %v641_v59 = vpop.f32.mrf.mxu1  ;;  %v677_v38 = vadd.f32 %v627_v58, %v580_v29 }
  0xcb   : > { %v678_v14 = vadd.f32 %v641_v59, %v581_v36  ;;  %v587_v26 = vadd.f32 %v577_v56, %v489_v40 }
  0xcf   : > { %v658_v3 = vpop.f32.mrf.mxu2 }
  0xd0   : > { %v681_v39 = vadd.f32 %v658_v3, %v584_v30 }
  0xd1   : > { %v629_v6 = vpop.f32.mrf.mxu0 }
  0xd2   : > { %v672_v5 = vpop.f32.mrf.mxu3  ;;  %v643_v7 = vpop.f32.mrf.mxu1  ;;  %v679_v20 = vadd.f32 %v629_v6, %v582_v47 }
  0xd3   : > { %v682_v22 = vadd.f32 %v672_v5, %v585_v37  ;;  %v680_v19 = vadd.f32 %v643_v7, %v583_v18 }
  0xd7   : > { %v660_v8 = vpop.f32.mrf.mxu2 }
  0xd8   : > { %v683_v32 = vadd.f32 %v660_v8, %v586_v48 }
  0xd9   : > { %v724_v28 = vpop.f32.mrf.mxu0 }
  0xda   : > { %v674_v9 = vpop.f32.mrf.mxu3  ;;  %v738_v31 = vpop.f32.mrf.mxu1  ;;  %v774_v16 = vadd.f32 %v724_v28, %v677_v38 }
  0xdb   : > { %v775_v15 = vadd.f32 %v738_v31, %v678_v14  ;;  %v684_v27 = vadd.f32 %v674_v9, %v587_v26 }
  0xdf   : > { %v755_v44 = vpop.f32.mrf.mxu2 }
  0xe0   : > { %v778_v24 = vadd.f32 %v755_v44, %v681_v39 }
  0xe1   : > { %v726_v49 = vpop.f32.mrf.mxu0 }
  0xe2   : > { %v769_v45 = vpop.f32.mrf.mxu3  ;;  %v782_v34 = vmax.f32 %v774_v16, %v778_v24  ;;  %v740_v51 = vpop.f32.mrf.mxu1  ;;  %v776_v33 = vadd.f32 %v726_v49, %v679_v20 }
  0xe3   : > { %v779_v23 = vadd.f32 %v769_v45, %v682_v22  ;;  %v777_v57 = vadd.f32 %v740_v51, %v680_v19 }
  0xe4   : > { %v791_v59 = vadd.f32 %v787_v50, %v782_v34 }
  0xe5   : > { %v783_v46 = vmax.f32 %v775_v15, %v779_v23 }
  0xe6   : > { %v795_v61 = vmax.f32 %v791_v59, 0.0 }
  0xe7   : > { %v757_v21 = vpop.f32.mrf.mxu2  ;;  %v792_v54 = vadd.f32 %v788_v52, %v783_v46 }
  0xe8   : > { %v780_v53 = vadd.f32 %v757_v21, %v683_v32 }
  0xe9   : > { %v796_v63 = vmax.f32 %v792_v54, 0.0 }
  0xea   : > { %v771_v55 = vpop.f32.mrf.mxu3  ;;  %v784_v42 = vmax.f32 %v776_v33, %v780_v53 }
  0xeb   : > { %v781_v58 = vadd.f32 %v771_v55, %v684_v27 }
  0xec   : > { %v793_v56 = vadd.f32 %v787_v50, %v784_v42 }
  0xed   : > { %v785_v43 = vmax.f32 %v777_v57, %v781_v58 }
  0xee   : > { %v797_v62 = vmax.f32 %v793_v56, 0.0 }
  0xef   : > { %v794_v60 = vadd.f32 %v788_v52, %v785_v43 }
  0xf0   : > { %v799_v1 = vpack.c.bf16 %v797_v62, %v795_v61 }
  0xf1   : > { %v798_v0 = vmax.f32 %v794_v60, 0.0 }
  0xf2   : > { %880 = vmatmul.bf16.vlgmr.msrb.gmra.mxu0 %v799_v1  ;;  %974 = vmatmul.bf16.vlgmr.msrb.gmra.mxu2 %v799_v1 }
  0xf3   : > { %v800_v2 = vpack.c.bf16 %v798_v0, %v796_v63 }
  0xf5   : > { %1260 = vmatmul.msk.bf16.vlgmr.msrb.gmra.mxu1 %vm864_vm2, %v800_v2  ;;  %1301 = vmatmul.msk.bf16.vlgmr.msrb.gmra.mxu3 %vm864_vm2, %v800_v2 }
 0x16f   : > { %v881_v3 = vpop.f32.mrf.mxu0 }
 0x172   : > { %v895_v4 = vpop.f32.mrf.mxu1 }
 0x173   : > { %v896_v7 = vadd.f32 %v895_v4, %v881_v3 }
 0x175   : > { %v975_v5 = vpop.f32.mrf.mxu2 }
 0x177   : > { %v883_v11 = vpop.f32.mrf.mxu0 }
 0x178   : > { %v989_v6 = vpop.f32.mrf.mxu3 }
 0x179   : > { %v990_v8 = vadd.f32 %v989_v6, %v975_v5 }
 0x17a   : > { %v897_v12 = vpop.f32.mrf.mxu1 }
 0x17b   : > { %v994_v9 = vmax.f32 %v896_v7, %v990_v8  ;;  %v898_v29 = vadd.f32 %v897_v12, %v883_v11 }
 0x17d   : > { %997 = vst.msk [vmem:[%s260_s9] sm:$0xff] %vm996_vm3, %v994_v9  ;;  %v977_v13 = vpop.f32.mrf.mxu2 }
 0x180   : > { %v991_v28 = vpop.f32.mrf.mxu3 }
 0x181   : > { %v992_v30 = vadd.f32 %v991_v28, %v977_v13 }
 0x183   : > { %v995_v31 = vmax.f32 %v898_v29, %v992_v30 }
 0x185   : > { %999 = vst.msk [vmem:[%s260_s9 + $0x8] sm:$0x3f] %vm998_vm5, %v995_v31 }
 0x186 PF: > { %s17_s18 = sadd.s32 1, %s1450_s18  }
 0x187   : > { %p14_p8 = scmp.ge.s32.totalorder %s17_s18, 4  }
 0x189   :  { %16 = sbr.rel (!%p14_p8) target bundleno = 2 (0x2), region = 94 }
 0x18e   :  { %1024 = vsyncpa [#allocation3], 1 }
 0x18f   :  { %1026 = vsyncpa [#allocation3 + $0x1], 1 }
 0x190   :  { %1027 = vsyncpa [#allocation5], 1 }

// kernel: cnn_forward.3
= control target key start
LH: loop header
LB: loop body
LE: loop exit
PB: predicated region body
PF: predicated region fallthrough
CT: control target
= control target key end

     0   :  { %vm177_vm0 = vcmask 1041408   ;;  %s2884_s0 = inlined_call_operand.vmem [shape: f32[32,84], index: 0, kind: input, shape index: {}]   ;;  %s2885_s1 = inlined_call_operand.vmem [shape: bf16[5,84,160], index: 1, kind: input, shape index: {}]   ;;  %s2886_s2 = inlined_call_operand.vmem [shape: f32[1,160], index: 2, kind: input, shape index: {}]   ;;  %s2887_s3 = inlined_call_operand.vmem [shape: bf16[160,80], index: 3, kind: input, shape index: {}]   ;;  %s2888_s4 = inlined_call_operand.vmem [shape: bf16[160,80], index: 4, kind: input, shape index: {}]   ;;  %s2889_s5 = inlined_call_operand.vmem [shape: bf16[5,80,120], index: 5, kind: input, shape index: {}]   ;;  %s2890_s6 = inlined_call_operand.vmem [shape: f32[1,120], index: 6, kind: input, shape index: {}]   ;;  %s2891_s7 = inlined_call_operand.vmem [shape: bf16[120,84], index: 7, kind: input, shape index: {}]   ;;  %s2892_s8 = inlined_call_operand.vmem [shape: f32[1,84], index: 8, kind: input, shape index: {}]   ;;  %s2893_s9 = inlined_call_operand.vmem [shape: bf16[84,10], index: 9, kind: input, shape index: {}]   ;;  %s2894_s10 = inlined_call_operand.vmem [shape: f32[1,10], index: 10, kind: input, shape index: {}]   ;;  %s2895_s11 = inlined_call_operand.hbm [shape: f32[2,10], index: 11, kind: output, shape index: {}]  }
   0x1   :  { %v1494_v0 = vld [vmem:[%s2885_s1 + $0xa8] sm:$0x33]  ;;  %v1531_v3 = vld [vmem:[%s2885_s1 + $0x98] sm:$0xf]  ;;  %v2072_v6 = vld [vmem:[%s2885_s1 + $0x9c] sm:$0xf0] }
   0x2   :  { %v149_v1 = vunpack.c.l.b16 %v1494_v0  ;;  %v150_v2 = vunpack.c.h.b16 %v1494_v0  ;;  %v2071_v7 = vld [vmem:[%s2885_s1 + $0x9c] sm:$0xf]  ;;  %v1533_v8 = vld [vmem:[%s2885_s1 + $0xa0] sm:$0xf0]  ;;  %v1532_v11 = vor.u32 %v2072_v6, %v1531_v3  ;;  %v1523_v13 = vld [vmem:[%s2885_s1 + $0x88] sm:$0xf] }
   0x3   :  { %v1536_v12 = vor.u32 %v2071_v7, %v1533_v8  ;;  %v2070_v14 = vld [vmem:[%s2885_s1 + $0x8c] sm:$0xf0]  ;;  %v2069_v15 = vld [vmem:[%s2885_s1 + $0x8c] sm:$0xf]  ;;  %v1525_v16 = vld [vmem:[%s2885_s1 + $0x90] sm:$0xf0] }
   0x4   :  { %v161_v4 = vpack.c.b16 %v149_v1, %v149_v1  ;;  %v162_v5 = vpack.c.b16 %v150_v2, %v150_v2  ;;  %v1524_v17 = vor.u32 %v2070_v14, %v1523_v13  ;;  %v1528_v18 = vor.u32 %v2069_v15, %v1525_v16  ;;  %v1515_v19 = vld [vmem:[%s2885_s1 + $0x78] sm:$0xf]  ;;  %v2068_v20 = vld [vmem:[%s2885_s1 + $0x7c] sm:$0xf0]  ;;  %v2067_v21 = vld [vmem:[%s2885_s1 + $0x7c] sm:$0xf] }
   0x5   :  { %v1517_v22 = vld [vmem:[%s2885_s1 + $0x80] sm:$0xf0]  ;;  %v1516_v23 = vor.u32 %v2068_v20, %v1515_v19  ;;  %v1507_v25 = vld [vmem:[%s2885_s1 + $0x68] sm:$0xf]  ;;  %v91_v26 = vld [vmem:[%s2885_s1 + $0x50] sm:$0x33] }
   0x6   :  { %v179_v9 = vsel %vm177_vm0, %v161_v4, 0  ;;  %v182_v10 = vsel %vm177_vm0, %v162_v5, 0  ;;  %v1520_v24 = vor.u32 %v2067_v21, %v1517_v22  ;;  %v2066_v27 = vld [vmem:[%s2885_s1 + $0x6c] sm:$0xf0]  ;;  %v2065_v28 = vld [vmem:[%s2885_s1 + $0x6c] sm:$0xf]  ;;  %v274_v31 = vunpack.c.l.b16 %v91_v26 }
   0x7   :  { %186 = vmatpush.bf16.msra.mxu0 %v179_v9  ;;  %200 = vmatpush.bf16.msra.mxu1 %v182_v10  ;;  %v1509_v29 = vld [vmem:[%s2885_s1 + $0x70] sm:$0xf0]  ;;  %v1499_v30 = vld [vmem:[%s2885_s1 + $0x58] sm:$0xf]  ;;  %v275_v32 = vunpack.c.h.b16 %v91_v26  ;;  %v1508_v33 = vor.u32 %v2066_v27, %v1507_v25  ;;  %v2064_v35 = vld [vmem:[%s2885_s1 + $0x5c] sm:$0xf0] }
   0x8   :  { %217 = vmatpush.bf16.msra.mxu2 %v179_v9  ;;  %231 = vmatpush.bf16.msra.mxu3 %v182_v10  ;;  %v1512_v34 = vor.u32 %v2065_v28, %v1509_v29  ;;  %v2063_v36 = vld [vmem:[%s2885_s1 + $0x5c] sm:$0xf]  ;;  %v1501_v37 = vld [vmem:[%s2885_s1 + $0x60] sm:$0xf0] }
   0xb   :  { %187 = vmatpush.bf16.msra.mxu0 %v1532_v11  ;;  %201 = vmatpush.bf16.msra.mxu1 %v1536_v12 }
   0xc   :  { %218 = vmatpush.bf16.msra.mxu2 %v1532_v11  ;;  %232 = vmatpush.bf16.msra.mxu3 %v1536_v12 }
   0xf   :  { %188 = vmatpush.bf16.msra.mxu0 %v1524_v17  ;;  %202 = vmatpush.bf16.msra.mxu1 %v1528_v18 }
  0x10   :  { %219 = vmatpush.bf16.msra.mxu2 %v1524_v17  ;;  %233 = vmatpush.bf16.msra.mxu3 %v1528_v18 }
  0x13   :  { %189 = vmatpush.bf16.msra.mxu0 %v1516_v23  ;;  %203 = vmatpush.bf16.msra.mxu1 %v1520_v24 }
  0x14   :  { %220 = vmatpush.bf16.msra.mxu2 %v1516_v23  ;;  %234 = vmatpush.bf16.msra.mxu3 %v1520_v24 }
  0x15   :  { %16 = vsyncpa [#allocation4], 0  ;;  %v286_v38 = vpack.c.b16 %v274_v31, %v274_v31  ;;  %v287_v39 = vpack.c.b16 %v275_v32, %v275_v32  ;;  %v1500_v40 = vor.u32 %v2064_v35, %v1499_v30  ;;  %v1504_v41 = vor.u32 %v2063_v36, %v1501_v37  ;;  %v1575_v42 = vld [vmem:[%s2885_s1 + $0x40] sm:$0xf]  ;;  %v2062_v43 = vld [vmem:[%s2885_s1 + $0x44] sm:$0xf0] }
  0x16   :  { %v1482_v44 = vld [vmem:[%s2884_s0 + $0x1] ss:$2 sm:$0xff]  ;;  %v1483_v45 = vld [vmem:[%s2884_s0 + $0x11] ss:$2 sm:$0x3f]  ;;  %vm173_vm1 = vcmask 687104   ;;  %v1576_v54 = vor.u32 %v2062_v43, %v1575_v42 }
  0x17   :  { %190 = vmatpush.bf16.msra.mxu0 %v1508_v33  ;;  %204 = vmatpush.bf16.msra.mxu1 %v1512_v34  ;;  %v1495_v46 = vld [vmem:[%s2884_s0 + $0x2] ss:$2 sm:$0xff]  ;;  %v1496_v47 = vld [vmem:[%s2884_s0 + $0x12] ss:$2 sm:$0x3f]  ;;  %v302_v48 = vsel %vm177_vm0, %v286_v38, 0  ;;  %v2325_v52 = vpack.c.bf16 %v1483_v45, %v1482_v44 }
  0x18   :  { %221 = vmatpush.bf16.msra.mxu2 %v1508_v33  ;;  %235 = vmatpush.bf16.msra.mxu3 %v1512_v34  ;;  %v305_v49 = vsel %vm177_vm0, %v287_v39, 0  ;;  %v2061_v50 = vld [vmem:[%s2885_s1 + $0x44] sm:$0xf]  ;;  %v1577_v51 = vld [vmem:[%s2885_s1 + $0x48] sm:$0xf0]  ;;  %v2327_v53 = vpack.c.bf16 %v1496_v47, %v1495_v46  ;;  %vm877_vm2 = vcmask 261120  }
  0x19   :  { %v1580_v55 = vor.u32 %v2061_v50, %v1577_v51  ;;  %v1567_v56 = vld [vmem:[%s2885_s1 + $0x30] sm:$0xf]  ;;  %v2060_v57 = vld [vmem:[%s2885_s1 + $0x34] sm:$0xf0]  ;;  %v2059_v58 = vld [vmem:[%s2885_s1 + $0x34] sm:$0xf] }
  0x1a   :  { %v1569_v59 = vld [vmem:[%s2885_s1 + $0x38] sm:$0xf0]  ;;  %v1568_v60 = vor.u32 %v2060_v57, %v1567_v56  ;;  %v1559_v62 = vld [vmem:[%s2885_s1 + $0x20] sm:$0xf]  ;;  %v2058_v63 = vld [vmem:[%s2885_s1 + $0x24] sm:$0xf0] }
  0x1b   :  { %191 = vmatpush.bf16.msra.mxu0 %v1500_v40  ;;  %205 = vmatpush.bf16.msra.mxu1 %v1504_v41  ;;  %v1572_v61 = vor.u32 %v2059_v58, %v1569_v59  ;;  %v2057_v0 = vld [vmem:[%s2885_s1 + $0x24] sm:$0xf]  ;;  %v1561_v1 = vld [vmem:[%s2885_s1 + $0x28] sm:$0xf0]  ;;  %v1560_v2 = vor.u32 %v2058_v63, %v1559_v62  ;;  %v1551_v4 = vld [vmem:[%s2885_s1 + $0x10] sm:$0xf] }
  0x1c   :  { %222 = vmatpush.bf16.msra.mxu2 %v1500_v40  ;;  %236 = vmatpush.bf16.msra.mxu3 %v1504_v41  ;;  %v1564_v3 = vor.u32 %v2057_v0, %v1561_v1  ;;  %v1595_v5 = vld [vmem:[%s2885_s1 + $0x100] sm:$0x33]  ;;  %v2056_v6 = vld [vmem:[%s2885_s1 + $0x14] sm:$0xf0]  ;;  %v2055_v7 = vld [vmem:[%s2885_s1 + $0x14] sm:$0xf] }
  0x1d   :  { %v1553_v8 = vld [vmem:[%s2885_s1 + $0x18] sm:$0xf0]  ;;  %v411_v9 = vunpack.c.l.b16 %v1595_v5  ;;  %v412_v10 = vunpack.c.h.b16 %v1595_v5  ;;  %v1552_v11 = vor.u32 %v2056_v6, %v1551_v4  ;;  %v1543_v13 = vld [vmem:[%s2885_s1] sm:$0xf]  ;;  %v2054_v14 = vld [vmem:[%s2885_s1 + $0x4] sm:$0xf0] }
  0x1e   :  { %1537 = vmatmul.msk.bf16.vlgmr.msra.gmra.mxu0 %vm173_vm1, %v2325_v52  ;;  %1538 = vmatmul.msk.bf16.vlgmr.msra.gmra.mxu1 %vm173_vm1, %v2325_v52  ;;  %v1556_v12 = vor.u32 %v2055_v7, %v1553_v8  ;;  %v2053_v15 = vld [vmem:[%s2885_s1 + $0x4] sm:$0xf]  ;;  %v1545_v16 = vld [vmem:[%s2885_s1 + $0x8] sm:$0xf0]  ;;  %v1544_v19 = vor.u32 %v2054_v14, %v1543_v13  ;;  %v1632_v23 = vld [vmem:[%s2885_s1 + $0xf0] sm:$0xf] }
  0x1f   :  { %309 = vmatpush.bf16.msrb.mxu0 %v302_v48  ;;  %323 = vmatpush.bf16.msrb.mxu1 %v305_v49  ;;  %v423_v17 = vpack.c.b16 %v411_v9, %v411_v9  ;;  %v424_v18 = vpack.c.b16 %v412_v10, %v412_v10  ;;  %v1548_v20 = vor.u32 %v2053_v15, %v1545_v16  ;;  %v92_v21 = vld [vmem:[%s2884_s0] ss:$2 sm:$0xff]  ;;  %v1481_v22 = vld [vmem:[%s2884_s0 + $0x10] ss:$2 sm:$0x3f]  ;;  %vm999_vm3 = vcmask 654336  }
  0x20   :  { %337 = vmatpush.bf16.msrb.mxu2 %v302_v48  ;;  %351 = vmatpush.bf16.msrb.mxu3 %v305_v49  ;;  %v2082_v24 = vld [vmem:[%s2885_s1 + $0xf4] sm:$0xf0]  ;;  %v2081_v27 = vld [vmem:[%s2885_s1 + $0xf4] sm:$0xf]  ;;  %v1634_v28 = vld [vmem:[%s2885_s1 + $0xf8] sm:$0xf0]  ;;  %v95_v29 = vpack.c.bf16 %v1481_v22, %v92_v21 }
  0x21   :  { %1539 = vmatmul.msk.bf16.vlgmr.msra.gmra.mxu2 %vm173_vm1, %v2327_v53  ;;  %1540 = vmatmul.msk.bf16.vlgmr.msra.gmra.mxu3 %vm173_vm1, %v2327_v53  ;;  %v436_v25 = vsel %vm177_vm0, %v423_v17, 0  ;;  %v439_v26 = vsel %vm177_vm0, %v424_v18, 0  ;;  %v1633_v30 = vor.u32 %v2082_v24, %v1632_v23  ;;  %v1637_v31 = vor.u32 %v2081_v27, %v1634_v28  ;;  %v1624_v32 = vld [vmem:[%s2885_s1 + $0xe0] sm:$0xf]  ;;  %v2080_v33 = vld [vmem:[%s2885_s1 + $0xe4] sm:$0xf0] }
  0x22   :  { %v2079_v34 = vld [vmem:[%s2885_s1 + $0xe4] sm:$0xf]  ;;  %v1626_v35 = vld [vmem:[%s2885_s1 + $0xe8] sm:$0xf0]  ;;  %v1625_v36 = vor.u32 %v2080_v33, %v1624_v32  ;;  %v1616_v38 = vld [vmem:[%s2885_s1 + $0xd0] sm:$0xf] }
  0x23   :  { %310 = vmatpush.bf16.msrb.mxu0 %v1576_v54  ;;  %324 = vmatpush.bf16.msrb.mxu1 %v1580_v55  ;;  %v1629_v37 = vor.u32 %v2079_v34, %v1626_v35  ;;  %v2078_v39 = vld [vmem:[%s2885_s1 + $0xd4] sm:$0xf0]  ;;  %v2077_v40 = vld [vmem:[%s2885_s1 + $0xd4] sm:$0xf]  ;;  %v1618_v41 = vld [vmem:[%s2885_s1 + $0xd8] sm:$0xf0] }
  0x24   :  { %338 = vmatpush.bf16.msrb.mxu2 %v1576_v54  ;;  %352 = vmatpush.bf16.msrb.mxu3 %v1580_v55  ;;  %v1652_v42 = vld [vmem:[%s2885_s1 + $0x158] sm:$0x33]  ;;  %v1617_v43 = vor.u32 %v2078_v39, %v1616_v38  ;;  %v1621_v44 = vor.u32 %v2077_v40, %v1618_v41  ;;  %v1608_v45 = vld [vmem:[%s2885_s1 + $0xc0] sm:$0xf]  ;;  %v2076_v46 = vld [vmem:[%s2885_s1 + $0xc4] sm:$0xf0] }
  0x25   :  { %v2075_v47 = vld [vmem:[%s2885_s1 + $0xc4] sm:$0xf]  ;;  %v1610_v48 = vld [vmem:[%s2885_s1 + $0xc8] sm:$0xf0]  ;;  %v556_v49 = vunpack.c.l.b16 %v1652_v42  ;;  %v557_v50 = vunpack.c.h.b16 %v1652_v42  ;;  %v1609_v51 = vor.u32 %v2076_v46, %v1608_v45  ;;  %v1600_v54 = vld [vmem:[%s2885_s1 + $0xb0] sm:$0xf] }
  0x26   :  { %v2074_v55 = vld [vmem:[%s2885_s1 + $0xb4] sm:$0xf0]  ;;  %v2073_v56 = vld [vmem:[%s2885_s1 + $0xb4] sm:$0xf]  ;;  %v1602_v57 = vld [vmem:[%s2885_s1 + $0xb8] sm:$0xf0] }
  0x27   :  { %311 = vmatpush.bf16.msrb.mxu0 %v1568_v60  ;;  %325 = vmatpush.bf16.msrb.mxu1 %v1572_v61  ;;  %v568_v58 = vpack.c.b16 %v556_v49, %v556_v49  ;;  %v569_v59 = vpack.c.b16 %v557_v50, %v557_v50  ;;  %v1596_v63 = vld [vmem:[%s2884_s0 + $0x3] ss:$2 sm:$0xff]  ;;  %v1597_v1 = vld [vmem:[%s2884_s0 + $0x13] ss:$2 sm:$0x3f]  ;;  %vm1001_vm4 = vcmask 652288  }
  0x28   :  { %339 = vmatpush.bf16.msrb.mxu2 %v1568_v60  ;;  %353 = vmatpush.bf16.msrb.mxu3 %v1572_v61  ;;  %v1601_v60 = vor.u32 %v2074_v55, %v1600_v54  ;;  %v1605_v61 = vor.u32 %v2073_v56, %v1602_v57  ;;  %v2091_v4 = vld [vmem:[%s2885_s1 + $0x14c] sm:$0xf]  ;;  %v1691_v5 = vld [vmem:[%s2885_s1 + $0x150] sm:$0xf0]  ;;  %v2485_v6 = vpack.c.bf16 %v1597_v1, %v1596_v63  ;;  %v1681_v9 = vld [vmem:[%s2885_s1 + $0x138] sm:$0xf] }
  0x29   :  { %v581_v62 = vsel %vm177_vm0, %v568_v58, 0  ;;  %v584_v0 = vsel %vm177_vm0, %v569_v59, 0  ;;  %v1694_v8 = vor.u32 %v2091_v4, %v1691_v5  ;;  %v2090_v10 = vld [vmem:[%s2885_s1 + $0x13c] sm:$0xf0]  ;;  %v1673_v15 = vld [vmem:[%s2885_s1 + $0x128] sm:$0xf] }
  0x2a   :  { %v1682_v13 = vor.u32 %v2090_v10, %v1681_v9  ;;  %v2087_v16 = vld [vmem:[%s2885_s1 + $0x12c] sm:$0xf]  ;;  %v1675_v17 = vld [vmem:[%s2885_s1 + $0x130] sm:$0xf0]  ;;  %v1665_v21 = vld [vmem:[%s2885_s1 + $0x118] sm:$0xf] }
  0x2b   :  { %312 = vmatpush.bf16.msrb.mxu0 %v1560_v2  ;;  %326 = vmatpush.bf16.msrb.mxu1 %v1564_v3  ;;  %v1709_v18 = vld [vmem:[%s2885_s1 + $0x1b0] sm:$0x33]  ;;  %v2086_v22 = vld [vmem:[%s2885_s1 + $0x11c] sm:$0xf0]  ;;  %v2085_v23 = vld [vmem:[%s2885_s1 + $0x11c] sm:$0xf] }
  0x2c   :  { %340 = vmatpush.bf16.msrb.mxu2 %v1560_v2  ;;  %354 = vmatpush.bf16.msrb.mxu3 %v1564_v3  ;;  %v1689_v2 = vld [vmem:[%s2885_s1 + $0x148] sm:$0xf]  ;;  %v2092_v3 = vld [vmem:[%s2885_s1 + $0x14c] sm:$0xf0]  ;;  %v1667_v24 = vld [vmem:[%s2885_s1 + $0x120] sm:$0xf0]  ;;  %v1666_v27 = vor.u32 %v2086_v22, %v1665_v21 }
  0x2d   :  { %v1690_v7 = vor.u32 %v2092_v3, %v1689_v2  ;;  %v1670_v28 = vor.u32 %v2085_v23, %v1667_v24  ;;  %v1659_v32 = vld [vmem:[%s2885_s1 + $0x110] sm:$0xf0]  ;;  %v1653_v38 = vld [vmem:[%s2884_s0 + $0x4] ss:$2 sm:$0xff]  ;;  %v1746_v41 = vld [vmem:[%s2885_s1 + $0x1a0] sm:$0xf] }
  0x2e   :  { %v1654_v40 = vld [vmem:[%s2884_s0 + $0x14] ss:$2 sm:$0x3f]  ;;  %v2102_v42 = vld [vmem:[%s2885_s1 + $0x1a4] sm:$0xf0]  ;;  %vm1378_vm5 = vcmask 1043456  }
  0x2f   :  { %313 = vmatpush.bf16.msrb.mxu0 %v1552_v11  ;;  %327 = vmatpush.bf16.msrb.mxu1 %v1556_v12  ;;  %v524_v45 = vpack.c.bf16 %v1654_v40, %v1653_v38  ;;  %v1747_v46 = vor.u32 %v2102_v42, %v1746_v41  ;;  %v2100_v49 = vld [vmem:[%s2885_s1 + $0x194] sm:$0xf0]  ;;  %v2099_v50 = vld [vmem:[%s2885_s1 + $0x194] sm:$0xf]  ;;  %v1730_v55 = vld [vmem:[%s2885_s1 + $0x180] sm:$0xf] }
  0x30   :  { %341 = vmatpush.bf16.msrb.mxu2 %v1552_v11  ;;  %355 = vmatpush.bf16.msrb.mxu3 %v1556_v12  ;;  %v2089_v11 = vld [vmem:[%s2885_s1 + $0x13c] sm:$0xf]  ;;  %v1683_v12 = vld [vmem:[%s2885_s1 + $0x140] sm:$0xf0]  ;;  %v2098_v56 = vld [vmem:[%s2885_s1 + $0x184] sm:$0xf0] }
  0x31   :  { %v1686_v14 = vor.u32 %v2089_v11, %v1683_v12  ;;  %v2097_v57 = vld [vmem:[%s2885_s1 + $0x184] sm:$0xf]  ;;  %v1732_v58 = vld [vmem:[%s2885_s1 + $0x188] sm:$0xf0]  ;;  %v1731_v59 = vor.u32 %v2098_v56, %v1730_v55  ;;  %v2095_v63 = vld [vmem:[%s2885_s1 + $0x174] sm:$0xf] }
  0x32   :  { %v1714_v3 = vld [vmem:[%s2885_s1 + $0x160] sm:$0xf]  ;;  %v2094_v4 = vld [vmem:[%s2885_s1 + $0x164] sm:$0xf0]  ;;  %v2093_v5 = vld [vmem:[%s2885_s1 + $0x164] sm:$0xf] }
  0x33   :  { %314 = vmatpush.bf16.msrb.mxu0 %v1544_v19  ;;  %328 = vmatpush.bf16.msrb.mxu1 %v1548_v20  ;;  %v1710_v9 = vld [vmem:[%s2884_s0 + $0x5] ss:$2 sm:$0xff]  ;;  %v1711_v10 = vld [vmem:[%s2884_s0 + $0x15] ss:$2 sm:$0x3f]  ;;  %vm1374_vm6 = vcmask 982016  }
  0x34   :  { %342 = vmatpush.bf16.msrb.mxu2 %v1544_v19  ;;  %356 = vmatpush.bf16.msrb.mxu3 %v1548_v20  ;;  %v1678_v20 = vor.u32 %v2087_v16, %v1675_v17  ;;  %v669_v11 = vpack.c.bf16 %v1711_v10, %v1710_v9  ;;  %v2047_v38 = vld [vmem:[%s2888_s4 + $0x20] sm:$0xff]  ;;  %v2036_v41 = vld [vmem:[%s2887_s3 + $0x18] sm:$0xff]  ;;  %s2170_s26 = smov [#allocation3]   ;;  %vm1463_vm7 = vcmask 74752  }
  0x35   :  { %v2046_v42 = vld [vmem:[%s2888_s4 + $0x18] sm:$0xff]  ;;  %v2051_v56 = vld [vmem:[%s2888_s4 + $0x40] sm:$0xff]  ;;  %s1470_s27 = sshll.u32 %s2170_s26, 4  ;;  %s1471_s27 = int_to_ptr.vmem [resolvable:$true] %s1470_s27 }
  0x36   :  { %1581 = vmatmul.msk.bf16.vlgmr.msrb.gmra.mxu0 %vm173_vm1, %v95_v29  ;;  %1582 = vmatmul.msk.bf16.vlgmr.msrb.gmra.mxu1 %vm173_vm1, %v95_v29  ;;  %v1657_v29 = vld [vmem:[%s2885_s1 + $0x108] sm:$0xf] }
  0x37   :  { %443 = vmatpush.bf16.msra.mxu0 %v436_v25  ;;  %457 = vmatpush.bf16.msra.mxu1 %v439_v26 }
  0x38   :  { %474 = vmatpush.bf16.msra.mxu2 %v436_v25  ;;  %488 = vmatpush.bf16.msra.mxu3 %v439_v26  ;;  %v701_v25 = vunpack.c.l.b16 %v1709_v18  ;;  %v702_v26 = vunpack.c.h.b16 %v1709_v18 }
  0x39   :  { %1583 = vmatmul.msk.bf16.vlgmr.msrb.gmra.mxu2 %vm173_vm1, %v2325_v52  ;;  %1584 = vmatmul.msk.bf16.vlgmr.msrb.gmra.mxu3 %vm173_vm1, %v2325_v52  ;;  %v1613_v52 = vor.u32 %v2075_v47, %v1610_v48  ;;  %v1738_v48 = vld [vmem:[%s2885_s1 + $0x190] sm:$0xf] }
  0x3a   :  { %v713_v33 = vpack.c.b16 %v701_v25, %v701_v25  ;;  %v714_v34 = vpack.c.b16 %v702_v26, %v702_v26  ;;  %v2040_v25 = vld [vmem:[%s2887_s3 + $0x38] sm:$0xff] }
  0x3b   :  { %444 = vmatpush.bf16.msra.mxu0 %v1633_v30  ;;  %458 = vmatpush.bf16.msra.mxu1 %v1637_v31  ;;  %v2050_v26 = vld [vmem:[%s2888_s4 + $0x38] sm:$0xff] }
  0x3c   :  { %475 = vmatpush.bf16.msra.mxu2 %v1633_v30  ;;  %489 = vmatpush.bf16.msra.mxu3 %v1637_v31  ;;  %v2084_v30 = vld [vmem:[%s2885_s1 + $0x10c] sm:$0xf0]  ;;  %v2083_v31 = vld [vmem:[%s2885_s1 + $0x10c] sm:$0xf]  ;;  %v729_v39 = vsel %vm177_vm0, %v714_v34, 0 }
  0x3d   :  { %v1658_v35 = vor.u32 %v2084_v30, %v1657_v29  ;;  %v2039_v29 = vld [vmem:[%s2887_s3 + $0x30] sm:$0xff]  ;;  %v2048_v34 = vld [vmem:[%s2888_s4 + $0x28] sm:$0xff] }
  0x3e   :  { %v2049_v30 = vld [vmem:[%s2888_s4 + $0x30] sm:$0xff] }
  0x3f   :  { %445 = vmatpush.bf16.msra.mxu0 %v1625_v36  ;;  %459 = vmatpush.bf16.msra.mxu1 %v1629_v37 }
  0x40   :  { %476 = vmatpush.bf16.msra.mxu2 %v1625_v36  ;;  %490 = vmatpush.bf16.msra.mxu3 %v1629_v37  ;;  %v1662_v36 = vor.u32 %v2083_v31, %v1659_v32  ;;  %v726_v37 = vsel %vm177_vm0, %v713_v33, 0  ;;  %v2038_v33 = vld [vmem:[%s2887_s3 + $0x28] sm:$0xff] }
  0x43   :  { %446 = vmatpush.bf16.msra.mxu0 %v1617_v43  ;;  %460 = vmatpush.bf16.msra.mxu1 %v1621_v44 }
  0x44   :  { %477 = vmatpush.bf16.msra.mxu2 %v1617_v43  ;;  %491 = vmatpush.bf16.msra.mxu3 %v1621_v44  ;;  %v2101_v43 = vld [vmem:[%s2885_s1 + $0x1a4] sm:$0xf]  ;;  %v1748_v44 = vld [vmem:[%s2885_s1 + $0x1a8] sm:$0xf0] }
  0x45   :  { %v1751_v47 = vor.u32 %v2101_v43, %v1748_v44 }
  0x47   :  { %447 = vmatpush.bf16.msra.mxu0 %v1609_v51  ;;  %461 = vmatpush.bf16.msra.mxu1 %v1613_v52 }
  0x48   :  { %478 = vmatpush.bf16.msra.mxu2 %v1609_v51  ;;  %492 = vmatpush.bf16.msra.mxu3 %v1613_v52  ;;  %v1740_v51 = vld [vmem:[%s2885_s1 + $0x198] sm:$0xf0]  ;;  %v1739_v52 = vor.u32 %v2100_v49, %v1738_v48 }
  0x49   :  { %v1743_v54 = vor.u32 %v2099_v50, %v1740_v51  ;;  %v2042_v50 = vld [vmem:[%s2887_s3 + $0x48] sm:$0xff] }
  0x4a   :  { %v2034_v51 = vld [vmem:[%s2887_s3 + $0x8] sm:$0xff] }
  0x4b   :  { %448 = vmatpush.bf16.msra.mxu0 %v1601_v60  ;;  %462 = vmatpush.bf16.msra.mxu1 %v1605_v61 }
  0x4c   :  { %479 = vmatpush.bf16.msra.mxu2 %v1601_v60  ;;  %493 = vmatpush.bf16.msra.mxu3 %v1605_v61  ;;  %v1735_v60 = vor.u32 %v2097_v57, %v1732_v58  ;;  %v1722_v61 = vld [vmem:[%s2885_s1 + $0x170] sm:$0xf]  ;;  %v2033_v57 = vld [vmem:[%s2887_s3] sm:$0xff] }
  0x4d   :  { %v2041_v58 = vld [vmem:[%s2887_s3 + $0x40] sm:$0xff] }
  0x4e   :  { %1638 = vmatmul.msk.bf16.vlgmr.msra.gmra.mxu0 %vm173_vm1, %v2327_v53  ;;  %1639 = vmatmul.msk.bf16.vlgmr.msra.gmra.mxu1 %vm173_vm1, %v2327_v53  ;;  %v2088_v53 = vld [vmem:[%s2885_s1 + $0x12c] sm:$0xf0] }
  0x4f   :  { %588 = vmatpush.bf16.msrb.mxu0 %v581_v62  ;;  %602 = vmatpush.bf16.msrb.mxu1 %v584_v0  ;;  %v1674_v19 = vor.u32 %v2088_v53, %v1673_v15 }
  0x50   :  { %619 = vmatpush.bf16.msrb.mxu2 %v581_v62  ;;  %633 = vmatpush.bf16.msrb.mxu3 %v584_v0  ;;  %v2096_v62 = vld [vmem:[%s2885_s1 + $0x174] sm:$0xf0]  ;;  %v1724_v0 = vld [vmem:[%s2885_s1 + $0x178] sm:$0xf0] }
  0x51   :  { %1640 = vmatmul.msk.bf16.vlgmr.msra.gmra.mxu2 %vm173_vm1, %v2485_v6  ;;  %1641 = vmatmul.msk.bf16.vlgmr.msra.gmra.mxu3 %vm173_vm1, %v2485_v6  ;;  %v1723_v1 = vor.u32 %v2096_v62, %v1722_v61  ;;  %v1727_v2 = vor.u32 %v2095_v63, %v1724_v0 }
  0x53   :  { %589 = vmatpush.bf16.msrb.mxu0 %v1690_v7  ;;  %603 = vmatpush.bf16.msrb.mxu1 %v1694_v8 }
  0x54   :  { %620 = vmatpush.bf16.msrb.mxu2 %v1690_v7  ;;  %634 = vmatpush.bf16.msrb.mxu3 %v1694_v8  ;;  %v1715_v7 = vor.u32 %v2094_v4, %v1714_v3 }
  0x57   :  { %590 = vmatpush.bf16.msrb.mxu0 %v1682_v13  ;;  %604 = vmatpush.bf16.msrb.mxu1 %v1686_v14 }
  0x58   :  { %621 = vmatpush.bf16.msrb.mxu2 %v1682_v13  ;;  %635 = vmatpush.bf16.msrb.mxu3 %v1686_v14 }
  0x5b   :  { %591 = vmatpush.bf16.msrb.mxu0 %v1674_v19  ;;  %605 = vmatpush.bf16.msrb.mxu1 %v1678_v20 }
  0x5c   :  { %622 = vmatpush.bf16.msrb.mxu2 %v1674_v19  ;;  %636 = vmatpush.bf16.msrb.mxu3 %v1678_v20 }
  0x5f   :  { %592 = vmatpush.bf16.msrb.mxu0 %v1666_v27  ;;  %606 = vmatpush.bf16.msrb.mxu1 %v1670_v28 }
  0x60   :  { %623 = vmatpush.bf16.msrb.mxu2 %v1666_v27  ;;  %637 = vmatpush.bf16.msrb.mxu3 %v1670_v28 }
  0x63   :  { %593 = vmatpush.bf16.msrb.mxu0 %v1658_v35  ;;  %607 = vmatpush.bf16.msrb.mxu1 %v1662_v36 }
  0x64   :  { %624 = vmatpush.bf16.msrb.mxu2 %v1658_v35  ;;  %638 = vmatpush.bf16.msrb.mxu3 %v1662_v36 }
  0x66   :  { %1695 = vmatmul.msk.bf16.vlgmr.msrb.gmra.mxu0 %vm173_vm1, %v2485_v6  ;;  %1696 = vmatmul.msk.bf16.vlgmr.msrb.gmra.mxu1 %vm173_vm1, %v2485_v6  ;;  %v1716_v6 = vld [vmem:[%s2885_s1 + $0x168] sm:$0xf0] }
  0x67   :  { %733 = vmatpush.bf16.msra.mxu0 %v726_v37  ;;  %747 = vmatpush.bf16.msra.mxu1 %v729_v39  ;;  %v1719_v8 = vor.u32 %v2093_v5, %v1716_v6 }
  0x68   :  { %764 = vmatpush.bf16.msra.mxu2 %v726_v37  ;;  %778 = vmatpush.bf16.msra.mxu3 %v729_v39  ;;  %v2037_v37 = vld [vmem:[%s2887_s3 + $0x20] sm:$0xff] }
  0x69   :  { %1697 = vmatmul.msk.bf16.vlgmr.msrb.gmra.mxu2 %vm173_vm1, %v524_v45  ;;  %1698 = vmatmul.msk.bf16.vlgmr.msrb.gmra.mxu3 %vm173_vm1, %v524_v45 }
  0x6b   :  { %734 = vmatpush.bf16.msra.mxu0 %v1747_v46  ;;  %748 = vmatpush.bf16.msra.mxu1 %v1751_v47 }
  0x6c   :  { %765 = vmatpush.bf16.msra.mxu2 %v1747_v46  ;;  %779 = vmatpush.bf16.msra.mxu3 %v1751_v47  ;;  %v2045_v46 = vld [vmem:[%s2888_s4 + $0x10] sm:$0xff]  ;;  %v2052_v47 = vld [vmem:[%s2888_s4 + $0x48] sm:$0xff] }
  0x6f   :  { %735 = vmatpush.bf16.msra.mxu0 %v1739_v52  ;;  %749 = vmatpush.bf16.msra.mxu1 %v1743_v54 }
  0x70   :  { %766 = vmatpush.bf16.msra.mxu2 %v1739_v52  ;;  %780 = vmatpush.bf16.msra.mxu3 %v1743_v54  ;;  %v2044_v52 = vld [vmem:[%s2888_s4 + $0x8] sm:$0xff] }
  0x73   :  { %736 = vmatpush.bf16.msra.mxu0 %v1731_v59  ;;  %750 = vmatpush.bf16.msra.mxu1 %v1735_v60 }
  0x74   :  { %767 = vmatpush.bf16.msra.mxu2 %v1731_v59  ;;  %781 = vmatpush.bf16.msra.mxu3 %v1735_v60  ;;  %v2043_v59 = vld [vmem:[%s2888_s4] sm:$0xff] }
  0x77   :  { %737 = vmatpush.bf16.msra.mxu0 %v1723_v1  ;;  %751 = vmatpush.bf16.msra.mxu1 %v1727_v2 }
  0x78   :  { %768 = vmatpush.bf16.msra.mxu2 %v1723_v1  ;;  %782 = vmatpush.bf16.msra.mxu3 %v1727_v2 }
  0x7b   :  { %738 = vmatpush.bf16.msra.mxu0 %v1715_v7  ;;  %752 = vmatpush.bf16.msra.mxu1 %v1719_v8 }
  0x7c   :  { %769 = vmatpush.bf16.msra.mxu2 %v1715_v7  ;;  %783 = vmatpush.bf16.msra.mxu3 %v1719_v8 }
  0x7e   :  { %1752 = vmatmul.msk.bf16.vlgmr.msra.gmra.mxu0 %vm173_vm1, %v524_v45  ;;  %1753 = vmatmul.msk.bf16.vlgmr.msra.gmra.mxu1 %vm173_vm1, %v524_v45  ;;  %v2035_v45 = vld [vmem:[%s2887_s3 + $0x10] sm:$0xff] }
  0x7f   :  { %1754 = vmatmul.msk.bf16.vlgmr.msra.gmra.mxu2 %vm173_vm1, %v669_v11  ;;  %1755 = vmatmul.msk.bf16.vlgmr.msra.gmra.mxu3 %vm173_vm1, %v669_v11 }
  0x80   :  { %881 = vmatpush.bf16.msrb.mxu0 %v2040_v25  ;;  %969 = vmatpush.bf16.msrb.mxu2 %v2050_v26 }
  0x81   :  { %989 = vmatpush.bf16.msrb.mxu3 %v2052_v47  ;;  %901 = vmatpush.bf16.msrb.mxu1 %v2042_v50 }
  0x84   :  { %882 = vmatpush.bf16.msrb.mxu0 %v2039_v29  ;;  %970 = vmatpush.bf16.msrb.mxu2 %v2049_v30 }
  0x85   :  { %990 = vmatpush.bf16.msrb.mxu3 %v2051_v56  ;;  %902 = vmatpush.bf16.msrb.mxu1 %v2041_v58  ;;  %v2117_v58 = vld [vmem:[%s2889_s5 + $0x70] sm:$0xff] }
  0x88   :  { %883 = vmatpush.bf16.msrb.mxu0 %v2038_v33  ;;  %971 = vmatpush.bf16.msrb.mxu2 %v2048_v34 }
  0x8c   :  { %884 = vmatpush.bf16.msrb.mxu0 %v2037_v37  ;;  %972 = vmatpush.bf16.msrb.mxu2 %v2047_v38 }
  0x90   :  { %885 = vmatpush.bf16.msrb.mxu0 %v2036_v41  ;;  %973 = vmatpush.bf16.msrb.mxu2 %v2046_v42 }
  0x94   :  { %886 = vmatpush.bf16.msrb.mxu0 %v2035_v45  ;;  %974 = vmatpush.bf16.msrb.mxu2 %v2045_v46 }
  0x98   :  { %887 = vmatpush.bf16.msrb.mxu0 %v2034_v51  ;;  %975 = vmatpush.bf16.msrb.mxu2 %v2044_v52 }
  0x9b   :  { %v2630_v12 = vpop.f32.mrf.mxu0  ;;  %v2632_v13 = vpop.f32.mrf.mxu1 }
  0x9c   :  { %888 = vmatpush.bf16.msrb.mxu0 %v2033_v57  ;;  %976 = vmatpush.bf16.msrb.mxu2 %v2043_v59  ;;  %v2112_v57 = vld [vmem:[%s2889_s5 + $0x48] sm:$0xff]  ;;  %v2107_v59 = vld [vmem:[%s2889_s5 + $0x20] sm:$0xff] }
  0x9d   :  { %1065 = vmatpush.bf16.msra.mxu1 %v2112_v57  ;;  %1111 = vmatpush.bf16.msra.mxu3 %v2107_v59  ;;  %v2139_v59 = vld [vmem:[%s2893_s9 + $0x20] sm:$0xff] }
  0xa0   :  { %1171 = vmatpush.bf16.msra.mxu2 %v2117_v58 }
  0xa3   :  { %v2638_v53 = vpop.f32.mrf.mxu0  ;;  %v2640_v16 = vpop.f32.mrf.mxu1 }
  0xa4   :  { %v2634_v14 = vpop.f32.mrf.mxu2  ;;  %v2636_v15 = vpop.f32.mrf.mxu3 }
  0xac   :  { %v2642_v17 = vpop.f32.mrf.mxu2  ;;  %v2644_v18 = vpop.f32.mrf.mxu3 }
  0xb3   :  { %v2646_v19 = vpop.f32.mrf.mxu0  ;;  %v2648_v20 = vpop.f32.mrf.mxu1 }
  0xb4   :  { %v317_v0 = vadd.f32 %v2646_v19, %v2630_v12  ;;  %v331_v1 = vadd.f32 %v2648_v20, %v2632_v13 }
  0xbb   :  { %v2654_v23 = vpop.f32.mrf.mxu0  ;;  %v2656_v24 = vpop.f32.mrf.mxu1 }
  0xbc   :  { %v2650_v21 = vpop.f32.mrf.mxu2  ;;  %v2652_v22 = vpop.f32.mrf.mxu3 }
  0xbd   :  { %v345_v2 = vadd.f32 %v2650_v21, %v2634_v14  ;;  %v359_v3 = vadd.f32 %v2652_v22, %v2636_v15  ;;  %v319_v14 = vadd.f32 %v2654_v23, %v2638_v53  ;;  %v333_v15 = vadd.f32 %v2656_v24, %v2640_v16 }
  0xc4   :  { %v2664_v27 = vpop.f32.mrf.mxu2  ;;  %v2666_v28 = vpop.f32.mrf.mxu3 }
  0xc5   :  { %v347_v21 = vadd.f32 %v2664_v27, %v2642_v17  ;;  %v361_v22 = vadd.f32 %v2666_v28, %v2644_v18 }
  0xcb   :  { %v450_v31 = vpop.f32.mrf.mxu0  ;;  %v464_v32 = vpop.f32.mrf.mxu1 }
  0xcc   :  { %v500_v6 = vadd.f32 %v450_v31, %v317_v0  ;;  %v501_v7 = vadd.f32 %v464_v32, %v331_v1  ;;  %v40_v31 = vld [vmem:[%s2886_s2] sm:$0x3]  ;;  %v2105_v1 = vld [vmem:[%s2889_s5 + $0x10] sm:$0xff] }
  0xcd   :  { %v804_v16 = vperm.slane %v40_v31, 1  ;;  %v2115_v0 = vld [vmem:[%s2889_s5 + $0x60] sm:$0xff] }
  0xd3   :  { %v2686_v39 = vpop.f32.mrf.mxu0  ;;  %v2688_v40 = vpop.f32.mrf.mxu1 }
  0xd4   :  { %v481_v35 = vpop.f32.mrf.mxu2  ;;  %v495_v36 = vpop.f32.mrf.mxu3  ;;  %v502_v34 = vadd.f32 %v2686_v39, %v319_v14 }
  0xd5   :  { %v504_v8 = vadd.f32 %v481_v35, %v345_v2  ;;  %v505_v9 = vadd.f32 %v495_v36, %v359_v3  ;;  %v503_v35 = vadd.f32 %v2688_v40, %v333_v15  ;;  %v803_v36 = vperm.slane %v40_v31, 0  ;;  %v2109_v2 = vld [vmem:[%s2889_s5 + $0x30] sm:$0xff]  ;;  %v2114_v3 = vld [vmem:[%s2889_s5 + $0x58] sm:$0xff] }
  0xdc   :  { %v483_v43 = vpop.f32.mrf.mxu2  ;;  %v497_v44 = vpop.f32.mrf.mxu3 }
  0xdd   :  { %v506_v53 = vadd.f32 %v483_v43, %v347_v21  ;;  %v507_v23 = vadd.f32 %v497_v44, %v361_v22  ;;  %v2118_v21 = vld [vmem:[%s2889_s5 + $0x78] sm:$0xff]  ;;  %v2123_v22 = vld [vmem:[%s2889_s5 + $0xa0] sm:$0xff] }
  0xe3   :  { %v595_v48 = vpop.f32.mrf.mxu0  ;;  %v609_v49 = vpop.f32.mrf.mxu1 }
  0xe4   :  { %v645_v10 = vadd.f32 %v595_v48, %v500_v6  ;;  %v646_v11 = vadd.f32 %v609_v49, %v501_v7  ;;  %v2113_v6 = vld [vmem:[%s2889_s5 + $0x50] sm:$0xff]  ;;  %v2103_v7 = vld [vmem:[%s2889_s5] sm:$0xff] }
  0xeb   :  { %v597_v60 = vpop.f32.mrf.mxu0  ;;  %v611_v61 = vpop.f32.mrf.mxu1 }
  0xec   :  { %v626_v54 = vpop.f32.mrf.mxu2  ;;  %v640_v55 = vpop.f32.mrf.mxu3  ;;  %v647_v17 = vadd.f32 %v597_v60, %v502_v34  ;;  %v648_v27 = vadd.f32 %v611_v61, %v503_v35  ;;  %v2111_v60 = vld [vmem:[%s2889_s5 + $0x40] sm:$0xff]  ;;  %v2116_v61 = vld [vmem:[%s2889_s5 + $0x68] sm:$0xff] }
  0xed   :  { %v649_v25 = vadd.f32 %v626_v54, %v504_v8  ;;  %v650_v26 = vadd.f32 %v640_v55, %v505_v9  ;;  %1066 = vmatpush.bf16.msra.mxu1 %v2111_v60  ;;  %1172 = vmatpush.bf16.msra.mxu2 %v2116_v61  ;;  %v2122_v8 = vld [vmem:[%s2889_s5 + $0x98] sm:$0xff]  ;;  %v2127_v9 = vld [vmem:[%s2889_s5 + $0xc0] sm:$0xff] }
  0xf1   :  { %1173 = vmatpush.bf16.msra.mxu2 %v2115_v0  ;;  %v2137_v0 = vld [vmem:[%s2893_s9 + $0x10] sm:$0xff] }
  0xf4   :  { %v628_v62 = vpop.f32.mrf.mxu2  ;;  %v642_v63 = vpop.f32.mrf.mxu3 }
  0xf5   :  { %v651_v38 = vadd.f32 %v628_v62, %v506_v53  ;;  %v652_v18 = vadd.f32 %v642_v63, %v507_v23  ;;  %v2106_v62 = vld [vmem:[%s2889_s5 + $0x18] sm:$0xff]  ;;  %1174 = vmatpush.bf16.msra.mxu2 %v2114_v3 }
  0xf6   :  { %1112 = vmatpush.bf16.msra.mxu3 %v2106_v62  ;;  %v2110_v63 = vld [vmem:[%s2889_s5 + $0x38] sm:$0xff] }
  0xf7   :  { %1067 = vmatpush.bf16.msra.mxu1 %v2110_v63  ;;  %v2138_v62 = vld [vmem:[%s2893_s9 + $0x18] sm:$0xff] }
  0xf9   :  { %1175 = vmatpush.bf16.msra.mxu2 %v2113_v6 }
  0xfa   :  { %1113 = vmatpush.bf16.msra.mxu3 %v2105_v1 }
  0xfb   :  { %v740_v4 = vpop.f32.mrf.mxu0  ;;  %v754_v5 = vpop.f32.mrf.mxu1  ;;  %1068 = vmatpush.bf16.msra.mxu1 %v2109_v2 }
  0xfc   :  { %v790_v29 = vadd.f32 %v740_v4, %v645_v10  ;;  %v791_v13 = vadd.f32 %v754_v5, %v646_v11  ;;  %v2104_v4 = vld [vmem:[%s2889_s5 + $0x8] sm:$0xff]  ;;  %v2121_v10 = vld [vmem:[%s2889_s5 + $0x90] sm:$0xff]  ;;  %v2126_v11 = vld [vmem:[%s2889_s5 + $0xb8] sm:$0xff] }
  0xfd   :  { %v2108_v5 = vld [vmem:[%s2889_s5 + $0x28] sm:$0xff] }
  0xfe   :  { %1114 = vmatpush.bf16.msra.mxu3 %v2104_v4  ;;  %v2136_v4 = vld [vmem:[%s2893_s9 + $0x8] sm:$0xff] }
  0xff   :  { %1069 = vmatpush.bf16.msra.mxu1 %v2108_v5 }
 0x102   :  { %v771_v12 = vpop.f32.mrf.mxu2  ;;  %v785_v19 = vpop.f32.mrf.mxu3  ;;  %1115 = vmatpush.bf16.msra.mxu3 %v2103_v7 }
 0x103   :  { %v794_v20 = vadd.f32 %v771_v12, %v649_v25  ;;  %v795_v30 = vadd.f32 %v785_v19, %v650_v26  ;;  %v742_v24 = vpop.f32.mrf.mxu0  ;;  %v756_v37 = vpop.f32.mrf.mxu1  ;;  %v2120_v25 = vld [vmem:[%s2889_s5 + $0x88] sm:$0xff]  ;;  %v2125_v26 = vld [vmem:[%s2889_s5 + $0xb0] sm:$0xff] }
 0x104   :  { %v792_v42 = vadd.f32 %v742_v24, %v647_v17  ;;  %v793_v45 = vadd.f32 %v756_v37, %v648_v27 }
 0x105   :  { %v798_v32 = vmax.f32 %v790_v29, %v794_v20  ;;  %v799_v33 = vmax.f32 %v791_v13, %v795_v30  ;;  %v2119_v29 = vld [vmem:[%s2889_s5 + $0x80] sm:$0xff]  ;;  %v2124_v13 = vld [vmem:[%s2889_s5 + $0xa8] sm:$0xff] }
 0x107   :  { %v807_v48 = vadd.f32 %v803_v36, %v798_v32  ;;  %v808_v39 = vadd.f32 %v804_v16, %v799_v33 }
 0x109   :  { %v811_v50 = vmax.f32 %v807_v48, 0.0  ;;  %v812_v51 = vmax.f32 %v808_v39, 0.0  ;;  %v2134_v39 = vld [vmem:[%s2891_s7 + $0x30] sm:$0xff] }
 0x10a   :  { %v773_v28 = vpop.f32.mrf.mxu2  ;;  %v787_v41 = vpop.f32.mrf.mxu3 }
 0x10b   :  { %v796_v46 = vadd.f32 %v773_v28, %v651_v38  ;;  %v797_v47 = vadd.f32 %v787_v41, %v652_v18 }
 0x10d   :  { %v800_v49 = vmax.f32 %v792_v42, %v796_v46  ;;  %v801_v40 = vmax.f32 %v793_v45, %v797_v47  ;;  %v1324_v45 = vld [vmem:[%s2891_s7 + $0x38] sm:$0xf] }
 0x10e   :  { %v1358_v46 = vunpack.c.l.b16 %v1324_v45 }
 0x10f   :  { %v809_v43 = vadd.f32 %v803_v36, %v800_v49  ;;  %v810_v44 = vadd.f32 %v804_v16, %v801_v40  ;;  %v2133_v49 = vld [vmem:[%s2891_s7 + $0x28] sm:$0xff]  ;;  %v2132_v40 = vld [vmem:[%s2891_s7 + $0x20] sm:$0xff] }
 0x110   :  { %v1366_v47 = vpack.c.b16 %v1358_v46, %v1358_v46 }
 0x111   :  { %v813_v52 = vmax.f32 %v809_v43, 0.0  ;;  %v814_v54 = vmax.f32 %v810_v44, 0.0  ;;  %v2131_v43 = vld [vmem:[%s2891_s7 + $0x18] sm:$0xff]  ;;  %v2130_v44 = vld [vmem:[%s2891_s7 + $0x10] sm:$0xff] }
 0x112   :  { %v1380_v48 = vsel %vm1378_vm5, %v1366_v47, 0 }
 0x113   :  { %v815_v55 = vpack.c.bf16 %v813_v52, %v811_v50  ;;  %v816_v56 = vpack.c.bf16 %v814_v54, %v812_v51  ;;  %v2129_v50 = vld [vmem:[%s2891_s7 + $0x8] sm:$0xff]  ;;  %v2128_v51 = vld [vmem:[%s2891_s7] sm:$0xff] }
 0x114   :  { %v1406_v54 = vld [vmem:[%s2893_s9 + $0x28] sm:$0x3] }
 0x115   :  { %889 = vmatmul.bf16.vlgmr.msrb.gmra.mxu0 %v815_v55  ;;  %1796 = vmatmul.msk.bf16.vlgmr.msrb.gmra.mxu1 %vm877_vm2, %v816_v56 }
 0x116   :  { %977 = vmatmul.bf16.vlgmr.msrb.gmra.mxu2 %v815_v55  ;;  %1837 = vmatmul.msk.bf16.vlgmr.msrb.gmra.mxu3 %vm877_vm2, %v816_v56  ;;  %v1432_v55 = vunpack.c.l.b16 %v1406_v54 }
 0x117   :  { %1232 = vmatpush.bf16.msrb.mxu2 %v2122_v8  ;;  %1293 = vmatpush.bf16.msrb.mxu1 %v2127_v9  ;;  %v2141_v8 = vld [vmem:[%s2890_s6] ss:$0 sm:$0xff] }
 0x118   :  { %1382 = vmatpush.bf16.msrb.mxu3 %v1380_v48  ;;  %v1438_v56 = vpack.c.b16 %v1432_v55, %v1432_v55 }
 0x11a   :  { %v1448_v57 = vsel %vm177_vm0, %v1438_v56, 0 }
 0x11b   :  { %1233 = vmatpush.bf16.msrb.mxu2 %v2121_v10  ;;  %1294 = vmatpush.bf16.msrb.mxu1 %v2126_v11 }
 0x11c   :  { %1383 = vmatpush.bf16.msrb.mxu3 %v2134_v39  ;;  %1452 = vmatpush.bf16.msra.mxu0 %v1448_v57 }
 0x11f   :  { %1234 = vmatpush.bf16.msrb.mxu2 %v2120_v25  ;;  %1295 = vmatpush.bf16.msrb.mxu1 %v2125_v26 }
 0x120   :  { %1384 = vmatpush.bf16.msrb.mxu3 %v2133_v49  ;;  %1453 = vmatpush.bf16.msra.mxu0 %v2139_v59 }
 0x123   :  { %1235 = vmatpush.bf16.msrb.mxu2 %v2119_v29  ;;  %1296 = vmatpush.bf16.msrb.mxu1 %v2124_v13 }
 0x124   :  { %1385 = vmatpush.bf16.msrb.mxu3 %v2132_v40  ;;  %1454 = vmatpush.bf16.msra.mxu0 %v2138_v62 }
 0x127   :  { %1236 = vmatpush.bf16.msrb.mxu2 %v2118_v21  ;;  %1297 = vmatpush.bf16.msrb.mxu1 %v2123_v22 }
 0x128   :  { %1386 = vmatpush.bf16.msrb.mxu3 %v2131_v43  ;;  %1455 = vmatpush.bf16.msra.mxu0 %v2137_v0 }
 0x12c   :  { %1387 = vmatpush.bf16.msrb.mxu3 %v2130_v44  ;;  %1456 = vmatpush.bf16.msra.mxu0 %v2136_v4 }
 0x130   :  { %1388 = vmatpush.bf16.msrb.mxu3 %v2129_v50 }
 0x134   :  { %1389 = vmatpush.bf16.msrb.mxu3 %v2128_v51 }
 0x192   :  { %v890_v12 = vpop.f32.mrf.mxu0  ;;  %v904_v19 = vpop.f32.mrf.mxu1 }
 0x193   :  { %v905_v14 = vadd.f32 %v904_v19, %v890_v12  ;;  %v2135_v12 = vld [vmem:[%s2893_s9] sm:$0xff]  ;;  %s1472_s9 = sshll.u32 %s2895_s11, 4  ;;  %s1473_s9 = int_to_ptr.hbm [resolvable:$true] %s1472_s9 }
 0x194   :  { %1457 = vmatpush.bf16.msra.mxu0 %v2135_v12  ;;  %v2142_v19 = vld [vmem:[%s2892_s8] ss:$0 sm:$0xff] }
 0x199   :  { %v978_v20 = vpop.f32.mrf.mxu2  ;;  %v992_v30 = vpop.f32.mrf.mxu3 }
 0x19a   :  { %v993_v15 = vadd.f32 %v992_v30, %v978_v20  ;;  %v892_v32 = vpop.f32.mrf.mxu0  ;;  %v906_v33 = vpop.f32.mrf.mxu1 }
 0x19b   :  { %v907_v53 = vadd.f32 %v906_v33, %v892_v32 }
 0x19c   :  { %v997_v31 = vmax.f32 %v905_v14, %v993_v15  ;;  %v2143_v14 = vld [vmem:[%s2894_s10] ss:$0 sm:$0xff] }
 0x19e   :  { %1000 = vst.msk [vmem:[#allocation2] sm:$0xff] %vm999_vm3, %v997_v31 }
 0x1a1   :  { %v980_v34 = vpop.f32.mrf.mxu2  ;;  %v994_v35 = vpop.f32.mrf.mxu3 }
 0x1a2   :  { %v995_v23 = vadd.f32 %v994_v35, %v980_v34 }
 0x1a4   :  { %v998_v36 = vmax.f32 %v907_v53, %v995_v23 }
 0x1a6   :  { %1002 = vst.msk [vmem:[#allocation2 + $0x8] sm:$0x3f] %vm1001_vm4, %v998_v36 }
 0x1ad   :  { %v1016_v16 = vld [vmem:[#allocation2 + $0x1] ss:$8 sm:$0x3]  ;;  %v1003_v24 = vld [vmem:[#allocation2] ss:$8 sm:$0x3] }
 0x1ae   :  { %v1017_v37 = vpack.c.bf16 %v1016_v16, %v1016_v16  ;;  %v1004_v17 = vpack.c.bf16 %v1003_v24, %v1003_v24  ;;  %v1122_v27 = vld [vmem:[#allocation2 + $0x2] ss:$8 sm:$0x3]  ;;  %v1244_v18 = vld [vmem:[#allocation2 + $0x4] ss:$8 sm:$0x3] }
 0x1af   :  { %v1123_v38 = vpack.c.bf16 %v1122_v27, %v1122_v27  ;;  %v1183_v28 = vld [vmem:[#allocation2 + $0x3] ss:$8 sm:$0x3]  ;;  %v1245_v41 = vpack.c.bf16 %v1244_v18, %v1244_v18 }
 0x1b0   :  { %1868 = vmatmul.msk.bf16.vlgmr.msra.gmra.mxu1 %vm999_vm3, %v1017_v37  ;;  %1889 = vmatmul.msk.bf16.vlgmr.msra.gmra.mxu3 %vm999_vm3, %v1004_v17  ;;  %v1184_v42 = vpack.c.bf16 %v1183_v28, %v1183_v28 }
 0x1b1   :  { %1920 = vmatmul.msk.bf16.vlgmr.msra.gmra.mxu2 %vm999_vm3, %v1123_v38 }
 0x1c0   :  { %1982 = vmatmul.msk.bf16.vlgmr.msrb.gmra.mxu1 %vm999_vm3, %v1245_v41 }
 0x1c1   :  { %1951 = vmatmul.msk.bf16.vlgmr.msrb.gmra.mxu2 %vm999_vm3, %v1184_v42 }
 0x22d   :  { %v1071_v52 = vpop.f32.mrf.mxu1 }
 0x233   :  { %v1117_v58 = vpop.f32.mrf.mxu3 }
 0x234   :  { %v1177_v60 = vpop.f32.mrf.mxu2  ;;  %v1118_v3 = vadd.f32 %v1117_v58, %v1071_v52 }
 0x235   :  { %v1073_v61 = vpop.f32.mrf.mxu1 }
 0x236   :  { %v1181_v5 = vadd.f32 %v1177_v60, %v1118_v3 }
 0x23b   :  { %v1119_v63 = vpop.f32.mrf.mxu3 }
 0x23c   :  { %v1179_v1 = vpop.f32.mrf.mxu2 }
 0x23d   :  { %v1299_v2 = vpop.f32.mrf.mxu1 }
 0x244   :  { %v1238_v6 = vpop.f32.mrf.mxu2 }
 0x245   :  { %v1242_v7 = vadd.f32 %v1238_v6, %v1181_v5  ;;  %v1301_v9 = vpop.f32.mrf.mxu1 }
 0x247   :  { %v1303_v10 = vadd.f32 %v1299_v2, %v1242_v7 }
 0x249   :  { %v1308_v11 = vadd.f32 %v2141_v8, %v1303_v10 }
 0x24b   :  { %v1309_v25 = vpack.c.bf16 %v1308_v11, %v1308_v11 }
 0x24c   :  { %v1240_v26 = vpop.f32.mrf.mxu2 }
 0x24d   :  { %2011 = vmatmul.msk.bf16.vlgmr.msrb.gmra.mxu3 %vm1374_vm6, %v1309_v25 }
 0x2d0   :  { %v1391_v29 = vpop.f32.mrf.mxu3 }
 0x2d1   :  { %v1392_v13 = vadd.f32 %v2142_v19, %v1391_v29 }
 0x2d3   :  { %v1395_v20 = vpack.c.bf16 %v1392_v13, %v1392_v13 }
 0x2d5   :  { %2032 = vmatmul.msk.bf16.vlgmr.msra.gmra.mxu0 %vm173_vm1, %v1395_v20 }
 0x2d8   :  { %v1393_v30 = vpop.f32.mrf.mxu3 }
 0x352   :  { %v1459_v15 = vpop.f32.mrf.mxu0 }
 0x353   :  { %v1460_v21 = vadd.f32 %v2143_v14, %v1459_v15 }
 0x355   :  { %1464 = vst.msk [vmem:[#allocation3] sm:$0x3] %vm1463_vm7, %v1460_v21 }
 0x356   :  { %1475 = dma.vmem_to_hbm [thread:$0]  %s1471_s27, 32, %s1473_s9, [#allocation4]  }
 0x35a   :  { %v1461_v22 = vpop.f32.mrf.mxu0 }
 0x35b   :  { %2168 = dma.done.wait [#allocation4], 32  }
 0x35c   :  { %2169 = vsyncadd [#allocation4], 4294967264 }
 0x35d   :  { %1480 = vsyncpa [#allocation4], 1 }

</bundles_post_ra>
